<compile_context>
chip_gen: v5e
topology: v5e:2x2
jax: 0.10.0
libtpu: 0.0.40
codegen_flags: <defaults>
</compile_context>

<pallas_src>
import functools

import jax
import jax.numpy as jnp
from jax.experimental import pallas as pl
from jax.experimental.pallas import tpu as pltpu


def _round_up(x, m):
    return (x + m - 1) // m * m


def _device_kind():
    try:
        return jax.devices()[0].device_kind.lower()
    except Exception:
        return ""


def _heads_per_block(num_heads, head_dim):
    """Group heads so one q/k/v slab is ~128 lanes wide (lane-dense accesses)."""
    if head_dim >= 128:
        return 1
    hpb = min(num_heads, max(1, 128 // head_dim))
    while hpb > 1 and num_heads % hpb != 0:
        hpb -= 1
    return hpb


def clip_attention_kernel(
    x_ref,
    wq_ref, bq_ref, wk_ref, bk_ref, wv_ref, bv_ref, wo_ref, bo_ref,
    out_ref,
    k_scratch, v_scratch, q_scratch, ctx_scratch,
    *, num_heads, head_dim, heads_per_block, tq, seq_len, seq_pad,
):
    qt = pl.program_id(1)

    # ---- K/V projections: once per batch element, resident across q tiles ----
    # (Requires the query-tile grid axis to be "arbitrary" -- sequential.)
    @pl.when(qt == 0)
    def _():
        xf = x_ref[0]                                                 # (T_pad, E) bf16
        k = jnp.dot(xf, wk_ref[...], preferred_element_type=jnp.float32) + bk_ref[...]
        v = jnp.dot(xf, wv_ref[...], preferred_element_type=jnp.float32) + bv_ref[...]
        k_scratch[...] = k.astype(jnp.bfloat16)
        v_scratch[...] = v.astype(jnp.bfloat16)

    # ---- Q projection for this query tile (scale folded into wq/bq host-side) ----
    q_start = pl.multiple_of(qt * tq, tq)
    xq = x_ref[0, pl.ds(q_start, tq), :]                              # (tq, E) bf16
    q = jnp.dot(xq, wq_ref[...], preferred_element_type=jnp.float32) + bq_ref[...]
    q_scratch[...] = q.astype(jnp.bfloat16)

    # ---- Key-padding mask, hoisted out of the per-head loop (computed once) ----
    if seq_pad > seq_len:
        key_ids = jax.lax.broadcasted_iota(jnp.int32, (tq, seq_pad), 1)
        mask_add = jnp.where(key_ids < seq_len, 0.0, -1e30).astype(jnp.float32)
    else:
        mask_add = None

    lane_block = heads_per_block * head_dim
    num_blocks = num_heads // heads_per_block

    # NOTE: with head_dim=64, contraction uses 64 of the 256 MXU rows on
    # v6e/v7x; with H*tq*T_pad exp calls on the single EUP the kernel may be
    # EUP-bound there -- softmax stays in f32 on the VPU/EUP, matmuls on MXU.
    def head_block(blk, carry):
        base = blk * lane_block
        if not isinstance(base, int):
            base = pl.multiple_of(base, lane_block)
        # One lane-dense load per operand per head block.
        q_slab = q_scratch[:, pl.ds(base, lane_block)]                # (tq, LB) bf16
        k_slab = k_scratch[:, pl.ds(base, lane_block)]                # (T_pad, LB) bf16
        v_slab = v_scratch[:, pl.ds(base, lane_block)]                # (T_pad, LB) bf16

        outs = []
        for hh in range(heads_per_block):
            lo = hh * head_dim
            qh = q_slab[:, lo:lo + head_dim]
            kh = k_slab[:, lo:lo + head_dim]
            vh = v_slab[:, lo:lo + head_dim]

            # q @ k^T on the MXU (NT dot_general), f32 accumulation.
            s = jax.lax.dot_general(
                qh, kh, (((1,), (1,)), ((), ())),
                preferred_element_type=jnp.float32)                   # (tq, T_pad)
            if mask_add is not None:
                s = s + mask_add

            s = s - jnp.max(s, axis=-1, keepdims=True)
            p = jnp.exp(s)                                            # f32, unnormalized
            l = jnp.sum(p, axis=-1, keepdims=True)                    # (tq, 1)

            o = jnp.dot(p.astype(jnp.bfloat16), vh,
                        preferred_element_type=jnp.float32)           # (tq, D)
            # Deferred softmax normalization on the small (tq, D) result (EUP).
            o = o * pl.reciprocal(l, approx=True)
            outs.append(o)

        slab = outs[0] if len(outs) == 1 else jnp.concatenate(outs, axis=-1)
        # One lane-dense store per head block (no masked partial stores).
        ctx_scratch[:, pl.ds(base, lane_block)] = slab.astype(jnp.bfloat16)
        return carry

    if num_blocks == 1:
        head_block(0, None)
    else:
        jax.lax.fori_loop(0, num_blocks, head_block, None, unroll=True)

    # ---- Output projection from the context scratch (one full-width matmul) ----
    out = jnp.dot(ctx_scratch[...], wo_ref[...],
                  preferred_element_type=jnp.float32) + bo_ref[...]
    out_ref[0] = out.astype(out_ref.dtype)


def prepare_params(params, *, num_heads):
    """One-time host transform: fold scale into q_proj, cast weights to bf16."""
    E = params["wq"].shape[0]
    scale = (E // num_heads) ** (-0.5)
    return {
        "wq": (params["wq"] * scale).astype(jnp.bfloat16),
        "bq": (params["bq"] * scale).astype(jnp.float32),
        "wk": params["wk"].astype(jnp.bfloat16),
        "bk": params["bk"].astype(jnp.float32),
        "wv": params["wv"].astype(jnp.bfloat16),
        "bv": params["bv"].astype(jnp.float32),
        "wo": params["wo"].astype(jnp.bfloat16),
        "bo": params["bo"].astype(jnp.float32),
    }


def clip_attention(hidden_states, kparams, *, num_heads, out_dtype=None):
    """hidden_states: (B, T, E). kparams: output of prepare_params()."""
    B, T, E = hidden_states.shape
    D = E // num_heads
    out_dtype = out_dtype if out_dtype is not None else hidden_states.dtype
    kind = _device_kind()

    # Query-tile size: 256 on v6e for long sequences (2x256^2 MXU), 128 else.
    if T <= 128:
        tq = _round_up(T, 8)
    elif "v6" in kind and T >= 256:
        tq = 256
    else:
        tq = 128
    T_pad = _round_up(T, tq)
    num_q_tiles = T_pad // tq

    # VMEM limit with headroom: v7x has only 64 MiB physical per TensorCore.
    if "v5" in kind or "v6" in kind:
        vmem_limit = 100 * 1024 * 1024
    else:
        vmem_limit = 48 * 1024 * 1024

    # bf16 activations: halves activation DMA bytes and the buffered x block.
    x = hidden_states.astype(jnp.bfloat16)
    if T_pad != T:
        x = jnp.pad(x, ((0, 0), (0, T_pad - T), (0, 0)))

    hpb = _heads_per_block(num_heads, D)

    kernel = functools.partial(
        clip_attention_kernel, num_heads=num_heads, head_dim=D,
        heads_per_block=hpb, tq=tq, seq_len=T, seq_pad=T_pad)

    def build_and_run(single_buffer_weights):
        if single_buffer_weights:
            # Grid-invariant weights: single VMEM buffer (no wasted double buffer).
            w_spec = pl.BlockSpec((E, E), lambda b, t: (0, 0),
                                  pipeline_mode=pl.Buffered(1))
            b_spec = pl.BlockSpec((1, E), lambda b, t: (0, 0),
                                  pipeline_mode=pl.Buffered(1))
        else:
            w_spec = pl.BlockSpec((E, E), lambda b, t: (0, 0))
            b_spec = pl.BlockSpec((1, E), lambda b, t: (0, 0))

        return pl.pallas_call(
            kernel,
            out_shape=jax.ShapeDtypeStruct((B, T_pad, E), out_dtype),
            grid_spec=pltpu.PrefetchScalarGridSpec(
                num_scalar_prefetch=0,
                grid=(B, num_q_tiles),
                in_specs=[
                    # Single x stream: full sequence, fetched once per batch elem.
                    pl.BlockSpec((1, T_pad, E), lambda b, t: (b, 0, 0)),
                    w_spec, b_spec,                                   # q_proj (pre-scaled)
                    w_spec, b_spec,                                   # k_proj
                    w_spec, b_spec,                                   # v_proj
                    w_spec, b_spec,                                   # out_proj
                ],
                out_specs=pl.BlockSpec((1, tq, E), lambda b, t: (b, t, 0)),
                scratch_shapes=[
                    pltpu.VMEM((T_pad, E), jnp.bfloat16),   # K (resident per batch elem)
                    pltpu.VMEM((T_pad, E), jnp.bfloat16),   # V (resident per batch elem)
                    pltpu.VMEM((tq, E), jnp.bfloat16),      # Q tile
                    pltpu.VMEM((tq, E), jnp.bfloat16),      # context accumulator
                ],
            ),
            compiler_params=pltpu.CompilerParams(
                # Query-tile axis must remain "arbitrary" (K/V written at qt==0).
                dimension_semantics=("parallel", "arbitrary"),
                vmem_limit_bytes=vmem_limit),
        )(
            x,
            kparams["wq"], kparams["bq"],
            kparams["wk"], kparams["bk"],
            kparams["wv"], kparams["bv"],
            kparams["wo"], kparams["bo"],
        )

    try:
        out = build_and_run(True)
    except Exception:
        # pipeline_mode=pl.Buffered(1) unsupported in this JAX build; fall back
        # to default double-buffered weight specs (correctness identical).
        out = build_and_run(False)

    if T_pad != T:
        out = out[:, :T, :]
    return out


def clip_attention_reference(x, params, *, num_heads):
    """Pure-JAX f32 reference mirroring the PyTorch forward (eval mode)."""
    B, T, E = x.shape
    D = E // num_heads
    scale = D ** (-0.5)

    def lin(x, w, b):
        return x @ w + b

    q = lin(x, params["wq"], params["bq"][0]) * scale
    k = lin(x, params["wk"], params["bk"][0])
    v = lin(x, params["wv"], params["bv"][0])

    def shape(t):  # (B, T, E) -> (B, H, T, D)
        return t.reshape(B, T, num_heads, D).transpose(0, 2, 1, 3)

    q, k, v = shape(q), shape(k), shape(v)
    attn = jax.nn.softmax(jnp.einsum("bhqd,bhkd->bhqk", q, k), axis=-1)
    out = jnp.einsum("bhqk,bhkd->bhqd", attn, v)
    out = out.transpose(0, 2, 1, 3).reshape(B, T, E)
    return lin(out, params["wo"], params["bo"][0])


if __name__ == "__main__":
    # Small config consistent with the module: hidden_size=32, num_heads=4 -> head_dim=8
    B, T, E, H = 2, 8, 32, 4

    key = jax.random.PRNGKey(0)
    keys = jax.random.split(key, 9)
    init = lambda k, shape, s=0.05: (s * jax.random.normal(k, shape)).astype(jnp.float32)

    # Weights stored as (in, out) == PyTorch Linear weight transposed.
    params = {
        "wq": init(keys[0], (E, E)), "bq": init(keys[1], (1, E)),
        "wk": init(keys[2], (E, E)), "bk": init(keys[3], (1, E)),
        "wv": init(keys[4], (E, E)), "bv": init(keys[5], (1, E)),
        "wo": init(keys[6], (E, E)), "bo": init(keys[7], (1, E)),
    }
    x = jax.random.normal(keys[8], (B, T, E), dtype=jnp.float32)

    kparams = prepare_params(params, num_heads=H)
    out = clip_attention(x, kparams, num_heads=H)
    out = jax.block_until_ready(out)

    ref = clip_attention_reference(x, params, num_heads=H)
    assert out.shape == (B, T, E)
    # bf16 activations/weights on the MXU + approx reciprocal -> relaxed tolerance.
    assert jnp.allclose(out, ref, atol=2e-2, rtol=2e-2), "mismatch vs reference"

    print("KERNEL_OK")
</pallas_src>

<mosaic_0001>
module attributes {stable_mosaic.version = 11 : i64} {
  func.func @clip_attention_kernel(%arg0: i32, %arg1: i32, %arg2: memref<1x8x32xbf16, #tpu.memory_space<vmem>>, %arg3: memref<32x32xbf16, #tpu.memory_space<vmem>>, %arg4: memref<1x32xf32, #tpu.memory_space<vmem>>, %arg5: memref<32x32xbf16, #tpu.memory_space<vmem>>, %arg6: memref<1x32xf32, #tpu.memory_space<vmem>>, %arg7: memref<32x32xbf16, #tpu.memory_space<vmem>>, %arg8: memref<1x32xf32, #tpu.memory_space<vmem>>, %arg9: memref<32x32xbf16, #tpu.memory_space<vmem>>, %arg10: memref<1x32xf32, #tpu.memory_space<vmem>>, %arg11: memref<1x8x32xf32, #tpu.memory_space<vmem>>, %arg12: memref<8x32xbf16, #tpu.memory_space<vmem>>, %arg13: memref<8x32xbf16, #tpu.memory_space<vmem>>, %arg14: memref<8x32xbf16, #tpu.memory_space<vmem>>, %arg15: memref<8x32xbf16, #tpu.memory_space<vmem>>) attributes {dimension_semantics = [#tpu.dimension_semantics<parallel>, #tpu.dimension_semantics<arbitrary>], iteration_bounds = array<i64: 2, 1>, scalar_prefetch = 0 : i64, scratch_operands = 4 : i64, tpu.core_type = #tpu.core_type<tc>, window_params = [{transform_indices = @transform_0, window_bounds = array<i64: 1, 8, 32>}, {pipeline_mode = #tpu.pipeline_mode<synchronous>, transform_indices = @transform_1, window_bounds = array<i64: 32, 32>}, {pipeline_mode = #tpu.pipeline_mode<synchronous>, transform_indices = @transform_2, window_bounds = array<i64: 1, 32>}, {pipeline_mode = #tpu.pipeline_mode<synchronous>, transform_indices = @transform_3, window_bounds = array<i64: 32, 32>}, {pipeline_mode = #tpu.pipeline_mode<synchronous>, transform_indices = @transform_4, window_bounds = array<i64: 1, 32>}, {pipeline_mode = #tpu.pipeline_mode<synchronous>, transform_indices = @transform_5, window_bounds = array<i64: 32, 32>}, {pipeline_mode = #tpu.pipeline_mode<synchronous>, transform_indices = @transform_6, window_bounds = array<i64: 1, 32>}, {pipeline_mode = #tpu.pipeline_mode<synchronous>, transform_indices = @transform_7, window_bounds = array<i64: 32, 32>}, {pipeline_mode = #tpu.pipeline_mode<synchronous>, transform_indices = @transform_8, window_bounds = array<i64: 1, 32>}, {transform_indices = @transform_9, window_bounds = array<i64: 1, 8, 32>}]} {
    %c0_i32 = arith.constant 0 : i32
    %0 = arith.cmpi eq, %arg1, %c0_i32 : i32
    %1 = arith.extui %0 : i1 to i32
    %c0_i32_0 = arith.constant 0 : i32
    %2 = arith.cmpi ne, %1, %c0_i32_0 : i32
    scf.if %2 {
      %c0_42 = arith.constant 0 : index
      %c0_43 = arith.constant 0 : index
      %c0_44 = arith.constant 0 : index
      %94 = vector.load %arg2[%c0_42, %c0_43, %c0_44] : memref<1x8x32xbf16, #tpu.memory_space<vmem>>, vector<1x8x32xbf16>
      %95 = vector.shape_cast %94 : vector<1x8x32xbf16> to vector<8x32xbf16>
      %c0_45 = arith.constant 0 : index
      %c0_46 = arith.constant 0 : index
      %96 = vector.load %arg5[%c0_45, %c0_46] : memref<32x32xbf16, #tpu.memory_space<vmem>>, vector<32x32xbf16>
      %cst_47 = arith.constant dense<0.000000e+00> : vector<8x32xf32>
      %97 = tpu.matmul %95, %96, %cst_47 {dimension_numbers = #tpu.dot_dimension_numbers<[1], [0], [0], [1], [0, 0, 1, 1], [], []>} : vector<8x32xbf16>, vector<32x32xbf16>, vector<8x32xf32> -> vector<8x32xf32>
      %c0_48 = arith.constant 0 : index
      %c0_49 = arith.constant 0 : index
      %98 = vector.load %arg6[%c0_48, %c0_49] : memref<1x32xf32, #tpu.memory_space<vmem>>, vector<1x32xf32>
      %99 = vector.broadcast %98 : vector<1x32xf32> to vector<8x32xf32>
      %100 = arith.addf %97, %99 : vector<8x32xf32>
      %c0_50 = arith.constant 0 : index
      %c0_51 = arith.constant 0 : index
      %101 = vector.load %arg7[%c0_50, %c0_51] : memref<32x32xbf16, #tpu.memory_space<vmem>>, vector<32x32xbf16>
      %cst_52 = arith.constant dense<0.000000e+00> : vector<8x32xf32>
      %102 = tpu.matmul %95, %101, %cst_52 {dimension_numbers = #tpu.dot_dimension_numbers<[1], [0], [0], [1], [0, 0, 1, 1], [], []>} : vector<8x32xbf16>, vector<32x32xbf16>, vector<8x32xf32> -> vector<8x32xf32>
      %c0_53 = arith.constant 0 : index
      %c0_54 = arith.constant 0 : index
      %103 = vector.load %arg8[%c0_53, %c0_54] : memref<1x32xf32, #tpu.memory_space<vmem>>, vector<1x32xf32>
      %104 = vector.broadcast %103 : vector<1x32xf32> to vector<8x32xf32>
      %105 = arith.addf %102, %104 : vector<8x32xf32>
      %106 = arith.truncf %100 : vector<8x32xf32> to vector<8x32xbf16>
      %c0_55 = arith.constant 0 : index
      %c0_56 = arith.constant 0 : index
      %107 = vector.load %arg12[%c0_55, %c0_56] : memref<8x32xbf16, #tpu.memory_space<vmem>>, vector<8x32xbf16>
      tpu.vector_store %arg12[%c0_55, %c0_56], %106 {strides = array<i32>} : memref<8x32xbf16, #tpu.memory_space<vmem>>, vector<8x32xbf16>,
      %108 = arith.truncf %105 : vector<8x32xf32> to vector<8x32xbf16>
      %c0_57 = arith.constant 0 : index
      %c0_58 = arith.constant 0 : index
      %109 = vector.load %arg13[%c0_57, %c0_58] : memref<8x32xbf16, #tpu.memory_space<vmem>>, vector<8x32xbf16>
      tpu.vector_store %arg13[%c0_57, %c0_58], %108 {strides = array<i32>} : memref<8x32xbf16, #tpu.memory_space<vmem>>, vector<8x32xbf16>,
    } else {
    }
    %c8_i32 = arith.constant 8 : i32
    %3 = arith.muli %arg1, %c8_i32 : i32
    %4 = tpu.assume_multiple %3, 8 : i32
    %c0 = arith.constant 0 : index
    %5 = arith.index_cast %4 : i32 to index
    %c0_1 = arith.constant 0 : index
    %6 = vector.load %arg2[%c0, %5, %c0_1] : memref<1x8x32xbf16, #tpu.memory_space<vmem>>, vector<1x8x32xbf16>
    %7 = vector.shape_cast %6 : vector<1x8x32xbf16> to vector<8x32xbf16>
    %c0_2 = arith.constant 0 : index
    %c0_3 = arith.constant 0 : index
    %8 = vector.load %arg3[%c0_2, %c0_3] : memref<32x32xbf16, #tpu.memory_space<vmem>>, vector<32x32xbf16>
    %cst = arith.constant dense<0.000000e+00> : vector<8x32xf32>
    %9 = tpu.matmul %7, %8, %cst {dimension_numbers = #tpu.dot_dimension_numbers<[1], [0], [0], [1], [0, 0, 1, 1], [], []>} : vector<8x32xbf16>, vector<32x32xbf16>, vector<8x32xf32> -> vector<8x32xf32>
    %c0_4 = arith.constant 0 : index
    %c0_5 = arith.constant 0 : index
    %10 = vector.load %arg4[%c0_4, %c0_5] : memref<1x32xf32, #tpu.memory_space<vmem>>, vector<1x32xf32>
    %11 = vector.broadcast %10 : vector<1x32xf32> to vector<8x32xf32>
    %12 = arith.addf %9, %11 : vector<8x32xf32>
    %13 = arith.truncf %12 : vector<8x32xf32> to vector<8x32xbf16>
    %c0_6 = arith.constant 0 : index
    %c0_7 = arith.constant 0 : index
    %14 = vector.load %arg14[%c0_6, %c0_7] : memref<8x32xbf16, #tpu.memory_space<vmem>>, vector<8x32xbf16>
    tpu.vector_store %arg14[%c0_6, %c0_7], %13 {strides = array<i32>} : memref<8x32xbf16, #tpu.memory_space<vmem>>, vector<8x32xbf16>,
    %c0_8 = arith.constant 0 : index
    %c0_9 = arith.constant 0 : index
    %15 = vector.load %arg14[%c0_8, %c0_9] : memref<8x32xbf16, #tpu.memory_space<vmem>>, vector<8x32xbf16>
    %c0_10 = arith.constant 0 : index
    %c0_11 = arith.constant 0 : index
    %16 = vector.load %arg12[%c0_10, %c0_11] : memref<8x32xbf16, #tpu.memory_space<vmem>>, vector<8x32xbf16>
    %c0_12 = arith.constant 0 : index
    %c0_13 = arith.constant 0 : index
    %17 = vector.load %arg13[%c0_12, %c0_13] : memref<8x32xbf16, #tpu.memory_space<vmem>>, vector<8x32xbf16>
    %18 = vector.extract_strided_slice %15 {offsets = [0, 0], sizes = [8, 8], strides = [1, 1]} : vector<8x32xbf16> to vector<8x8xbf16>
    %19 = vector.extract_strided_slice %16 {offsets = [0, 0], sizes = [8, 8], strides = [1, 1]} : vector<8x32xbf16> to vector<8x8xbf16>
    %20 = vector.extract_strided_slice %17 {offsets = [0, 0], sizes = [8, 8], strides = [1, 1]} : vector<8x32xbf16> to vector<8x8xbf16>
    %cst_14 = arith.constant dense<0.000000e+00> : vector<8x8xf32>
    %21 = tpu.matmul %18, %19, %cst_14 {dimension_numbers = #tpu.dot_dimension_numbers<[1], [1], [0], [0], [0, 0, 1, 0], [], []>} : vector<8x8xbf16>, vector<8x8xbf16>, vector<8x8xf32> -> vector<8x8xf32>
    %cst_15 = arith.constant dense<0xFF800000> : vector<8xf32>
    %22 = vector.multi_reduction <maximumf>, %21, %cst_15 [1] : vector<8x8xf32> to vector<8xf32>
    %23 = vector.shape_cast %22 : vector<8xf32> to vector<8x1xf32>
    %24 = vector.broadcast %23 : vector<8x1xf32> to vector<8x8xf32>
    %25 = arith.subf %21, %24 : vector<8x8xf32>
    %26 = math.exp %25 : vector<8x8xf32>
    %cst_16 = arith.constant dense<0.000000e+00> : vector<8xf32>
    %27 = vector.multi_reduction <add>, %26, %cst_16 [1] : vector<8x8xf32> to vector<8xf32>
    %28 = vector.shape_cast %27 : vector<8xf32> to vector<8x1xf32>
    %29 = arith.truncf %26 : vector<8x8xf32> to vector<8x8xbf16>
    %cst_17 = arith.constant dense<0.000000e+00> : vector<8x8xf32>
    %30 = tpu.matmul %29, %20, %cst_17 {dimension_numbers = #tpu.dot_dimension_numbers<[1], [0], [0], [1], [0, 0, 1, 1], [], []>} : vector<8x8xbf16>, vector<8x8xbf16>, vector<8x8xf32> -> vector<8x8xf32>
    %31 = tpu.reciprocal %28 {approx = true} : vector<8x1xf32> -> vector<8x1xf32>
    %32 = vector.broadcast %31 : vector<8x1xf32> to vector<8x8xf32>
    %33 = arith.mulf %30, %32 : vector<8x8xf32>
    %34 = vector.extract_strided_slice %15 {offsets = [0, 8], sizes = [8, 8], strides = [1, 1]} : vector<8x32xbf16> to vector<8x8xbf16>
    %35 = vector.extract_strided_slice %16 {offsets = [0, 8], sizes = [8, 8], strides = [1, 1]} : vector<8x32xbf16> to vector<8x8xbf16>
    %36 = vector.extract_strided_slice %17 {offsets = [0, 8], sizes = [8, 8], strides = [1, 1]} : vector<8x32xbf16> to vector<8x8xbf16>
    %cst_18 = arith.constant dense<0.000000e+00> : vector<8x8xf32>
    %37 = tpu.matmul %34, %35, %cst_18 {dimension_numbers = #tpu.dot_dimension_numbers<[1], [1], [0], [0], [0, 0, 1, 0], [], []>} : vector<8x8xbf16>, vector<8x8xbf16>, vector<8x8xf32> -> vector<8x8xf32>
    %cst_19 = arith.constant dense<0xFF800000> : vector<8xf32>
    %38 = vector.multi_reduction <maximumf>, %37, %cst_19 [1] : vector<8x8xf32> to vector<8xf32>
    %39 = vector.shape_cast %38 : vector<8xf32> to vector<8x1xf32>
    %40 = vector.broadcast %39 : vector<8x1xf32> to vector<8x8xf32>
    %41 = arith.subf %37, %40 : vector<8x8xf32>
    %42 = math.exp %41 : vector<8x8xf32>
    %cst_20 = arith.constant dense<0.000000e+00> : vector<8xf32>
    %43 = vector.multi_reduction <add>, %42, %cst_20 [1] : vector<8x8xf32> to vector<8xf32>
    %44 = vector.shape_cast %43 : vector<8xf32> to vector<8x1xf32>
    %45 = arith.truncf %42 : vector<8x8xf32> to vector<8x8xbf16>
    %cst_21 = arith.constant dense<0.000000e+00> : vector<8x8xf32>
    %46 = tpu.matmul %45, %36, %cst_21 {dimension_numbers = #tpu.dot_dimension_numbers<[1], [0], [0], [1], [0, 0, 1, 1], [], []>} : vector<8x8xbf16>, vector<8x8xbf16>, vector<8x8xf32> -> vector<8x8xf32>
    %47 = tpu.reciprocal %44 {approx = true} : vector<8x1xf32> -> vector<8x1xf32>
    %48 = vector.broadcast %47 : vector<8x1xf32> to vector<8x8xf32>
    %49 = arith.mulf %46, %48 : vector<8x8xf32>
    %50 = vector.extract_strided_slice %15 {offsets = [0, 16], sizes = [8, 8], strides = [1, 1]} : vector<8x32xbf16> to vector<8x8xbf16>
    %51 = vector.extract_strided_slice %16 {offsets = [0, 16], sizes = [8, 8], strides = [1, 1]} : vector<8x32xbf16> to vector<8x8xbf16>
    %52 = vector.extract_strided_slice %17 {offsets = [0, 16], sizes = [8, 8], strides = [1, 1]} : vector<8x32xbf16> to vector<8x8xbf16>
    %cst_22 = arith.constant dense<0.000000e+00> : vector<8x8xf32>
    %53 = tpu.matmul %50, %51, %cst_22 {dimension_numbers = #tpu.dot_dimension_numbers<[1], [1], [0], [0], [0, 0, 1, 0], [], []>} : vector<8x8xbf16>, vector<8x8xbf16>, vector<8x8xf32> -> vector<8x8xf32>
    %cst_23 = arith.constant dense<0xFF800000> : vector<8xf32>
    %54 = vector.multi_reduction <maximumf>, %53, %cst_23 [1] : vector<8x8xf32> to vector<8xf32>
    %55 = vector.shape_cast %54 : vector<8xf32> to vector<8x1xf32>
    %56 = vector.broadcast %55 : vector<8x1xf32> to vector<8x8xf32>
    %57 = arith.subf %53, %56 : vector<8x8xf32>
    %58 = math.exp %57 : vector<8x8xf32>
    %cst_24 = arith.constant dense<0.000000e+00> : vector<8xf32>
    %59 = vector.multi_reduction <add>, %58, %cst_24 [1] : vector<8x8xf32> to vector<8xf32>
    %60 = vector.shape_cast %59 : vector<8xf32> to vector<8x1xf32>
    %61 = arith.truncf %58 : vector<8x8xf32> to vector<8x8xbf16>
    %cst_25 = arith.constant dense<0.000000e+00> : vector<8x8xf32>
    %62 = tpu.matmul %61, %52, %cst_25 {dimension_numbers = #tpu.dot_dimension_numbers<[1], [0], [0], [1], [0, 0, 1, 1], [], []>} : vector<8x8xbf16>, vector<8x8xbf16>, vector<8x8xf32> -> vector<8x8xf32>
    %63 = tpu.reciprocal %60 {approx = true} : vector<8x1xf32> -> vector<8x1xf32>
    %64 = vector.broadcast %63 : vector<8x1xf32> to vector<8x8xf32>
    %65 = arith.mulf %62, %64 : vector<8x8xf32>
    %66 = vector.extract_strided_slice %15 {offsets = [0, 24], sizes = [8, 8], strides = [1, 1]} : vector<8x32xbf16> to vector<8x8xbf16>
    %67 = vector.extract_strided_slice %16 {offsets = [0, 24], sizes = [8, 8], strides = [1, 1]} : vector<8x32xbf16> to vector<8x8xbf16>
    %68 = vector.extract_strided_slice %17 {offsets = [0, 24], sizes = [8, 8], strides = [1, 1]} : vector<8x32xbf16> to vector<8x8xbf16>
    %cst_26 = arith.constant dense<0.000000e+00> : vector<8x8xf32>
    %69 = tpu.matmul %66, %67, %cst_26 {dimension_numbers = #tpu.dot_dimension_numbers<[1], [1], [0], [0], [0, 0, 1, 0], [], []>} : vector<8x8xbf16>, vector<8x8xbf16>, vector<8x8xf32> -> vector<8x8xf32>
    %cst_27 = arith.constant dense<0xFF800000> : vector<8xf32>
    %70 = vector.multi_reduction <maximumf>, %69, %cst_27 [1] : vector<8x8xf32> to vector<8xf32>
    %71 = vector.shape_cast %70 : vector<8xf32> to vector<8x1xf32>
    %72 = vector.broadcast %71 : vector<8x1xf32> to vector<8x8xf32>
    %73 = arith.subf %69, %72 : vector<8x8xf32>
    %74 = math.exp %73 : vector<8x8xf32>
    %cst_28 = arith.constant dense<0.000000e+00> : vector<8xf32>
    %75 = vector.multi_reduction <add>, %74, %cst_28 [1] : vector<8x8xf32> to vector<8xf32>
    %76 = vector.shape_cast %75 : vector<8xf32> to vector<8x1xf32>
    %77 = arith.truncf %74 : vector<8x8xf32> to vector<8x8xbf16>
    %cst_29 = arith.constant dense<0.000000e+00> : vector<8x8xf32>
    %78 = tpu.matmul %77, %68, %cst_29 {dimension_numbers = #tpu.dot_dimension_numbers<[1], [0], [0], [1], [0, 0, 1, 1], [], []>} : vector<8x8xbf16>, vector<8x8xbf16>, vector<8x8xf32> -> vector<8x8xf32>
    %79 = tpu.reciprocal %76 {approx = true} : vector<8x1xf32> -> vector<8x1xf32>
    %80 = vector.broadcast %79 : vector<8x1xf32> to vector<8x8xf32>
    %81 = arith.mulf %78, %80 : vector<8x8xf32>
    %82 = tpu.concatenate %33, %49, %65, %81 in 1 : vector<8x8xf32>, vector<8x8xf32>, vector<8x8xf32>, vector<8x8xf32> -> vector<8x32xf32>
    %83 = arith.truncf %82 : vector<8x32xf32> to vector<8x32xbf16>
    %c0_30 = arith.constant 0 : index
    %c0_31 = arith.constant 0 : index
    %84 = vector.load %arg15[%c0_30, %c0_31] : memref<8x32xbf16, #tpu.memory_space<vmem>>, vector<8x32xbf16>
    tpu.vector_store %arg15[%c0_30, %c0_31], %83 {strides = array<i32>} : memref<8x32xbf16, #tpu.memory_space<vmem>>, vector<8x32xbf16>,
    %c0_32 = arith.constant 0 : index
    %c0_33 = arith.constant 0 : index
    %85 = vector.load %arg15[%c0_32, %c0_33] : memref<8x32xbf16, #tpu.memory_space<vmem>>, vector<8x32xbf16>
    %c0_34 = arith.constant 0 : index
    %c0_35 = arith.constant 0 : index
    %86 = vector.load %arg9[%c0_34, %c0_35] : memref<32x32xbf16, #tpu.memory_space<vmem>>, vector<32x32xbf16>
    %cst_36 = arith.constant dense<0.000000e+00> : vector<8x32xf32>
    %87 = tpu.matmul %85, %86, %cst_36 {dimension_numbers = #tpu.dot_dimension_numbers<[1], [0], [0], [1], [0, 0, 1, 1], [], []>} : vector<8x32xbf16>, vector<32x32xbf16>, vector<8x32xf32> -> vector<8x32xf32>
    %c0_37 = arith.constant 0 : index
    %c0_38 = arith.constant 0 : index
    %88 = vector.load %arg10[%c0_37, %c0_38] : memref<1x32xf32, #tpu.memory_space<vmem>>, vector<1x32xf32>
    %89 = vector.broadcast %88 : vector<1x32xf32> to vector<8x32xf32>
    %90 = arith.addf %87, %89 : vector<8x32xf32>
    %c0_39 = arith.constant 0 : index
    %c0_40 = arith.constant 0 : index
    %c0_41 = arith.constant 0 : index
    %91 = vector.load %arg11[%c0_39, %c0_40, %c0_41] : memref<1x8x32xf32, #tpu.memory_space<vmem>>, vector<1x8x32xf32>
    %92 = vector.shape_cast %91 : vector<1x8x32xf32> to vector<8x32xf32>
    %93 = vector.shape_cast %90 : vector<8x32xf32> to vector<1x8x32xf32>
    tpu.vector_store %arg11[%c0_39, %c0_40, %c0_41], %93 {strides = array<i32>} : memref<1x8x32xf32, #tpu.memory_space<vmem>>, vector<1x8x32xf32>,
    return
  }
  func.func @transform_0(%arg0: i32, %arg1: i32) -> (i32, i32, i32) {
    %c0_i32 = arith.constant 0 : i32
    %c0_i32_0 = arith.constant 0 : i32
    %c0_i32_1 = arith.constant 0 : i32
    return %arg0, %c0_i32, %c0_i32_0 : i32, i32, i32
  }
  func.func @transform_1(%arg0: i32, %arg1: i32) -> (i32, i32) {
    %c0_i32 = arith.constant 0 : i32
    %c0_i32_0 = arith.constant 0 : i32
    %c0_i32_1 = arith.constant 0 : i32
    return %c0_i32, %c0_i32_0 : i32, i32
  }
  func.func @transform_2(%arg0: i32, %arg1: i32) -> (i32, i32) {
    %c0_i32 = arith.constant 0 : i32
    %c0_i32_0 = arith.constant 0 : i32
    %c0_i32_1 = arith.constant 0 : i32
    return %c0_i32, %c0_i32_0 : i32, i32
  }
  func.func @transform_3(%arg0: i32, %arg1: i32) -> (i32, i32) {
    %c0_i32 = arith.constant 0 : i32
    %c0_i32_0 = arith.constant 0 : i32
    %c0_i32_1 = arith.constant 0 : i32
    return %c0_i32, %c0_i32_0 : i32, i32
  }
  func.func @transform_4(%arg0: i32, %arg1: i32) -> (i32, i32) {
    %c0_i32 = arith.constant 0 : i32
    %c0_i32_0 = arith.constant 0 : i32
    %c0_i32_1 = arith.constant 0 : i32
    return %c0_i32, %c0_i32_0 : i32, i32
  }
  func.func @transform_5(%arg0: i32, %arg1: i32) -> (i32, i32) {
    %c0_i32 = arith.constant 0 : i32
    %c0_i32_0 = arith.constant 0 : i32
    %c0_i32_1 = arith.constant 0 : i32
    return %c0_i32, %c0_i32_0 : i32, i32
  }
  func.func @transform_6(%arg0: i32, %arg1: i32) -> (i32, i32) {
    %c0_i32 = arith.constant 0 : i32
    %c0_i32_0 = arith.constant 0 : i32
    %c0_i32_1 = arith.constant 0 : i32
    return %c0_i32, %c0_i32_0 : i32, i32
  }
  func.func @transform_7(%arg0: i32, %arg1: i32) -> (i32, i32) {
    %c0_i32 = arith.constant 0 : i32
    %c0_i32_0 = arith.constant 0 : i32
    %c0_i32_1 = arith.constant 0 : i32
    return %c0_i32, %c0_i32_0 : i32, i32
  }
  func.func @transform_8(%arg0: i32, %arg1: i32) -> (i32, i32) {
    %c0_i32 = arith.constant 0 : i32
    %c0_i32_0 = arith.constant 0 : i32
    %c0_i32_1 = arith.constant 0 : i32
    return %c0_i32, %c0_i32_0 : i32, i32
  }
  func.func @transform_9(%arg0: i32, %arg1: i32) -> (i32, i32, i32) {
    %c0_i32 = arith.constant 0 : i32
    %c0_i32_0 = arith.constant 0 : i32
    return %arg0, %arg1, %c0_i32 : i32, i32, i32
  }
}

module attributes {stable_mosaic.version = 11 : i64} {
  func.func @clip_attention_kernel(%arg0: i32, %arg1: i32, %arg2: memref<1x8x32xbf16, #tpu.memory_space<vmem>>, %arg3: memref<32x32xbf16, #tpu.memory_space<vmem>>, %arg4: memref<1x32xf32, #tpu.memory_space<vmem>>, %arg5: memref<32x32xbf16, #tpu.memory_space<vmem>>, %arg6: memref<1x32xf32, #tpu.memory_space<vmem>>, %arg7: memref<32x32xbf16, #tpu.memory_space<vmem>>, %arg8: memref<1x32xf32, #tpu.memory_space<vmem>>, %arg9: memref<32x32xbf16, #tpu.memory_space<vmem>>, %arg10: memref<1x32xf32, #tpu.memory_space<vmem>>, %arg11: memref<1x8x32xf32, #tpu.memory_space<vmem>>, %arg12: memref<8x32xbf16, #tpu.memory_space<vmem>>, %arg13: memref<8x32xbf16, #tpu.memory_space<vmem>>, %arg14: memref<8x32xbf16, #tpu.memory_space<vmem>>, %arg15: memref<8x32xbf16, #tpu.memory_space<vmem>>) attributes {dimension_semantics = [#tpu.dimension_semantics<parallel>, #tpu.dimension_semantics<arbitrary>], iteration_bounds = array<i64: 2, 1>, scalar_prefetch = 0 : i64, scratch_operands = 4 : i64, tpu.core_type = #tpu.core_type<tc>, window_params = [{transform_indices = @transform_0, window_bounds = array<i64: 1, 8, 32>}, {pipeline_mode = #tpu.pipeline_mode<synchronous>, transform_indices = @transform_1, window_bounds = array<i64: 32, 32>}, {pipeline_mode = #tpu.pipeline_mode<synchronous>, transform_indices = @transform_2, window_bounds = array<i64: 1, 32>}, {pipeline_mode = #tpu.pipeline_mode<synchronous>, transform_indices = @transform_3, window_bounds = array<i64: 32, 32>}, {pipeline_mode = #tpu.pipeline_mode<synchronous>, transform_indices = @transform_4, window_bounds = array<i64: 1, 32>}, {pipeline_mode = #tpu.pipeline_mode<synchronous>, transform_indices = @transform_5, window_bounds = array<i64: 32, 32>}, {pipeline_mode = #tpu.pipeline_mode<synchronous>, transform_indices = @transform_6, window_bounds = array<i64: 1, 32>}, {pipeline_mode = #tpu.pipeline_mode<synchronous>, transform_indices = @transform_7, window_bounds = array<i64: 32, 32>}, {pipeline_mode = #tpu.pipeline_mode<synchronous>, transform_indices = @transform_8, window_bounds = array<i64: 1, 32>}, {transform_indices = @transform_9, window_bounds = array<i64: 1, 8, 32>}]} {
    %c0_i32 = arith.constant 0 : i32
    %0 = arith.cmpi eq, %arg1, %c0_i32 : i32
    %1 = arith.extui %0 : i1 to i32
    %c0_i32_0 = arith.constant 0 : i32
    %2 = arith.cmpi ne, %1, %c0_i32_0 : i32
    scf.if %2 {
      %c0_42 = arith.constant 0 : index
      %c0_43 = arith.constant 0 : index
      %c0_44 = arith.constant 0 : index
      %94 = vector.load %arg2[%c0_42, %c0_43, %c0_44] : memref<1x8x32xbf16, #tpu.memory_space<vmem>>, vector<1x8x32xbf16>
      %95 = vector.shape_cast %94 : vector<1x8x32xbf16> to vector<8x32xbf16>
      %c0_45 = arith.constant 0 : index
      %c0_46 = arith.constant 0 : index
      %96 = vector.load %arg5[%c0_45, %c0_46] : memref<32x32xbf16, #tpu.memory_space<vmem>>, vector<32x32xbf16>
      %cst_47 = arith.constant dense<0.000000e+00> : vector<8x32xf32>
      %97 = tpu.matmul %95, %96, %cst_47 {dimension_numbers = #tpu.dot_dimension_numbers<[1], [0], [0], [1], [0, 0, 1, 1], [], []>} : vector<8x32xbf16>, vector<32x32xbf16>, vector<8x32xf32> -> vector<8x32xf32>
      %c0_48 = arith.constant 0 : index
      %c0_49 = arith.constant 0 : index
      %98 = vector.load %arg6[%c0_48, %c0_49] : memref<1x32xf32, #tpu.memory_space<vmem>>, vector<1x32xf32>
      %99 = vector.broadcast %98 : vector<1x32xf32> to vector<8x32xf32>
      %100 = arith.addf %97, %99 : vector<8x32xf32>
      %c0_50 = arith.constant 0 : index
      %c0_51 = arith.constant 0 : index
      %101 = vector.load %arg7[%c0_50, %c0_51] : memref<32x32xbf16, #tpu.memory_space<vmem>>, vector<32x32xbf16>
      %cst_52 = arith.constant dense<0.000000e+00> : vector<8x32xf32>
      %102 = tpu.matmul %95, %101, %cst_52 {dimension_numbers = #tpu.dot_dimension_numbers<[1], [0], [0], [1], [0, 0, 1, 1], [], []>} : vector<8x32xbf16>, vector<32x32xbf16>, vector<8x32xf32> -> vector<8x32xf32>
      %c0_53 = arith.constant 0 : index
      %c0_54 = arith.constant 0 : index
      %103 = vector.load %arg8[%c0_53, %c0_54] : memref<1x32xf32, #tpu.memory_space<vmem>>, vector<1x32xf32>
      %104 = vector.broadcast %103 : vector<1x32xf32> to vector<8x32xf32>
      %105 = arith.addf %102, %104 : vector<8x32xf32>
      %106 = arith.truncf %100 : vector<8x32xf32> to vector<8x32xbf16>
      %c0_55 = arith.constant 0 : index
      %c0_56 = arith.constant 0 : index
      %107 = vector.load %arg12[%c0_55, %c0_56] : memref<8x32xbf16, #tpu.memory_space<vmem>>, vector<8x32xbf16>
      tpu.vector_store %arg12[%c0_55, %c0_56], %106 {strides = array<i32>} : memref<8x32xbf16, #tpu.memory_space<vmem>>, vector<8x32xbf16>,
      %108 = arith.truncf %105 : vector<8x32xf32> to vector<8x32xbf16>
      %c0_57 = arith.constant 0 : index
      %c0_58 = arith.constant 0 : index
      %109 = vector.load %arg13[%c0_57, %c0_58] : memref<8x32xbf16, #tpu.memory_space<vmem>>, vector<8x32xbf16>
      tpu.vector_store %arg13[%c0_57, %c0_58], %108 {strides = array<i32>} : memref<8x32xbf16, #tpu.memory_space<vmem>>, vector<8x32xbf16>,
    } else {
    }
    %c8_i32 = arith.constant 8 : i32
    %3 = arith.muli %arg1, %c8_i32 : i32
    %4 = tpu.assume_multiple %3, 8 : i32
    %c0 = arith.constant 0 : index
    %5 = arith.index_cast %4 : i32 to index
    %c0_1 = arith.constant 0 : index
    %6 = vector.load %arg2[%c0, %5, %c0_1] : memref<1x8x32xbf16, #tpu.memory_space<vmem>>, vector<1x8x32xbf16>
    %7 = vector.shape_cast %6 : vector<1x8x32xbf16> to vector<8x32xbf16>
    %c0_2 = arith.constant 0 : index
    %c0_3 = arith.constant 0 : index
    %8 = vector.load %arg3[%c0_2, %c0_3] : memref<32x32xbf16, #tpu.memory_space<vmem>>, vector<32x32xbf16>
    %cst = arith.constant dense<0.000000e+00> : vector<8x32xf32>
    %9 = tpu.matmul %7, %8, %cst {dimension_numbers = #tpu.dot_dimension_numbers<[1], [0], [0], [1], [0, 0, 1, 1], [], []>} : vector<8x32xbf16>, vector<32x32xbf16>, vector<8x32xf32> -> vector<8x32xf32>
    %c0_4 = arith.constant 0 : index
    %c0_5 = arith.constant 0 : index
    %10 = vector.load %arg4[%c0_4, %c0_5] : memref<1x32xf32, #tpu.memory_space<vmem>>, vector<1x32xf32>
    %11 = vector.broadcast %10 : vector<1x32xf32> to vector<8x32xf32>
    %12 = arith.addf %9, %11 : vector<8x32xf32>
    %13 = arith.truncf %12 : vector<8x32xf32> to vector<8x32xbf16>
    %c0_6 = arith.constant 0 : index
    %c0_7 = arith.constant 0 : index
    %14 = vector.load %arg14[%c0_6, %c0_7] : memref<8x32xbf16, #tpu.memory_space<vmem>>, vector<8x32xbf16>
    tpu.vector_store %arg14[%c0_6, %c0_7], %13 {strides = array<i32>} : memref<8x32xbf16, #tpu.memory_space<vmem>>, vector<8x32xbf16>,
    %c0_8 = arith.constant 0 : index
    %c0_9 = arith.constant 0 : index
    %15 = vector.load %arg14[%c0_8, %c0_9] : memref<8x32xbf16, #tpu.memory_space<vmem>>, vector<8x32xbf16>
    %c0_10 = arith.constant 0 : index
    %c0_11 = arith.constant 0 : index
    %16 = vector.load %arg12[%c0_10, %c0_11] : memref<8x32xbf16, #tpu.memory_space<vmem>>, vector<8x32xbf16>
    %c0_12 = arith.constant 0 : index
    %c0_13 = arith.constant 0 : index
    %17 = vector.load %arg13[%c0_12, %c0_13] : memref<8x32xbf16, #tpu.memory_space<vmem>>, vector<8x32xbf16>
    %18 = vector.extract_strided_slice %15 {offsets = [0, 0], sizes = [8, 8], strides = [1, 1]} : vector<8x32xbf16> to vector<8x8xbf16>
    %19 = vector.extract_strided_slice %16 {offsets = [0, 0], sizes = [8, 8], strides = [1, 1]} : vector<8x32xbf16> to vector<8x8xbf16>
    %20 = vector.extract_strided_slice %17 {offsets = [0, 0], sizes = [8, 8], strides = [1, 1]} : vector<8x32xbf16> to vector<8x8xbf16>
    %cst_14 = arith.constant dense<0.000000e+00> : vector<8x8xf32>
    %21 = tpu.matmul %18, %19, %cst_14 {dimension_numbers = #tpu.dot_dimension_numbers<[1], [1], [0], [0], [0, 0, 1, 0], [], []>} : vector<8x8xbf16>, vector<8x8xbf16>, vector<8x8xf32> -> vector<8x8xf32>
    %cst_15 = arith.constant dense<0xFF800000> : vector<8xf32>
    %22 = vector.multi_reduction <maximumf>, %21, %cst_15 [1] : vector<8x8xf32> to vector<8xf32>
    %23 = vector.shape_cast %22 : vector<8xf32> to vector<8x1xf32>
    %24 = vector.broadcast %23 : vector<8x1xf32> to vector<8x8xf32>
    %25 = arith.subf %21, %24 : vector<8x8xf32>
    %26 = math.exp %25 : vector<8x8xf32>
    %cst_16 = arith.constant dense<0.000000e+00> : vector<8xf32>
    %27 = vector.multi_reduction <add>, %26, %cst_16 [1] : vector<8x8xf32> to vector<8xf32>
    %28 = vector.shape_cast %27 : vector<8xf32> to vector<8x1xf32>
    %29 = arith.truncf %26 : vector<8x8xf32> to vector<8x8xbf16>
    %cst_17 = arith.constant dense<0.000000e+00> : vector<8x8xf32>
    %30 = tpu.matmul %29, %20, %cst_17 {dimension_numbers = #tpu.dot_dimension_numbers<[1], [0], [0], [1], [0, 0, 1, 1], [], []>} : vector<8x8xbf16>, vector<8x8xbf16>, vector<8x8xf32> -> vector<8x8xf32>
    %31 = tpu.reciprocal %28 {approx = true} : vector<8x1xf32> -> vector<8x1xf32>
    %32 = vector.broadcast %31 : vector<8x1xf32> to vector<8x8xf32>
    %33 = arith.mulf %30, %32 : vector<8x8xf32>
    %34 = vector.extract_strided_slice %15 {offsets = [0, 8], sizes = [8, 8], strides = [1, 1]} : vector<8x32xbf16> to vector<8x8xbf16>
    %35 = vector.extract_strided_slice %16 {offsets = [0, 8], sizes = [8, 8], strides = [1, 1]} : vector<8x32xbf16> to vector<8x8xbf16>
    %36 = vector.extract_strided_slice %17 {offsets = [0, 8], sizes = [8, 8], strides = [1, 1]} : vector<8x32xbf16> to vector<8x8xbf16>
    %cst_18 = arith.constant dense<0.000000e+00> : vector<8x8xf32>
    %37 = tpu.matmul %34, %35, %cst_18 {dimension_numbers = #tpu.dot_dimension_numbers<[1], [1], [0], [0], [0, 0, 1, 0], [], []>} : vector<8x8xbf16>, vector<8x8xbf16>, vector<8x8xf32> -> vector<8x8xf32>
    %cst_19 = arith.constant dense<0xFF800000> : vector<8xf32>
    %38 = vector.multi_reduction <maximumf>, %37, %cst_19 [1] : vector<8x8xf32> to vector<8xf32>
    %39 = vector.shape_cast %38 : vector<8xf32> to vector<8x1xf32>
    %40 = vector.broadcast %39 : vector<8x1xf32> to vector<8x8xf32>
    %41 = arith.subf %37, %40 : vector<8x8xf32>
    %42 = math.exp %41 : vector<8x8xf32>
    %cst_20 = arith.constant dense<0.000000e+00> : vector<8xf32>
    %43 = vector.multi_reduction <add>, %42, %cst_20 [1] : vector<8x8xf32> to vector<8xf32>
    %44 = vector.shape_cast %43 : vector<8xf32> to vector<8x1xf32>
    %45 = arith.truncf %42 : vector<8x8xf32> to vector<8x8xbf16>
    %cst_21 = arith.constant dense<0.000000e+00> : vector<8x8xf32>
    %46 = tpu.matmul %45, %36, %cst_21 {dimension_numbers = #tpu.dot_dimension_numbers<[1], [0], [0], [1], [0, 0, 1, 1], [], []>} : vector<8x8xbf16>, vector<8x8xbf16>, vector<8x8xf32> -> vector<8x8xf32>
    %47 = tpu.reciprocal %44 {approx = true} : vector<8x1xf32> -> vector<8x1xf32>
    %48 = vector.broadcast %47 : vector<8x1xf32> to vector<8x8xf32>
    %49 = arith.mulf %46, %48 : vector<8x8xf32>
    %50 = vector.extract_strided_slice %15 {offsets = [0, 16], sizes = [8, 8], strides = [1, 1]} : vector<8x32xbf16> to vector<8x8xbf16>
    %51 = vector.extract_strided_slice %16 {offsets = [0, 16], sizes = [8, 8], strides = [1, 1]} : vector<8x32xbf16> to vector<8x8xbf16>
    %52 = vector.extract_strided_slice %17 {offsets = [0, 16], sizes = [8, 8], strides = [1, 1]} : vector<8x32xbf16> to vector<8x8xbf16>
    %cst_22 = arith.constant dense<0.000000e+00> : vector<8x8xf32>
    %53 = tpu.matmul %50, %51, %cst_22 {dimension_numbers = #tpu.dot_dimension_numbers<[1], [1], [0], [0], [0, 0, 1, 0], [], []>} : vector<8x8xbf16>, vector<8x8xbf16>, vector<8x8xf32> -> vector<8x8xf32>
    %cst_23 = arith.constant dense<0xFF800000> : vector<8xf32>
    %54 = vector.multi_reduction <maximumf>, %53, %cst_23 [1] : vector<8x8xf32> to vector<8xf32>
    %55 = vector.shape_cast %54 : vector<8xf32> to vector<8x1xf32>
    %56 = vector.broadcast %55 : vector<8x1xf32> to vector<8x8xf32>
    %57 = arith.subf %53, %56 : vector<8x8xf32>
    %58 = math.exp %57 : vector<8x8xf32>
    %cst_24 = arith.constant dense<0.000000e+00> : vector<8xf32>
    %59 = vector.multi_reduction <add>, %58, %cst_24 [1] : vector<8x8xf32> to vector<8xf32>
    %60 = vector.shape_cast %59 : vector<8xf32> to vector<8x1xf32>
    %61 = arith.truncf %58 : vector<8x8xf32> to vector<8x8xbf16>
    %cst_25 = arith.constant dense<0.000000e+00> : vector<8x8xf32>
    %62 = tpu.matmul %61, %52, %cst_25 {dimension_numbers = #tpu.dot_dimension_numbers<[1], [0], [0], [1], [0, 0, 1, 1], [], []>} : vector<8x8xbf16>, vector<8x8xbf16>, vector<8x8xf32> -> vector<8x8xf32>
    %63 = tpu.reciprocal %60 {approx = true} : vector<8x1xf32> -> vector<8x1xf32>
    %64 = vector.broadcast %63 : vector<8x1xf32> to vector<8x8xf32>
    %65 = arith.mulf %62, %64 : vector<8x8xf32>
    %66 = vector.extract_strided_slice %15 {offsets = [0, 24], sizes = [8, 8], strides = [1, 1]} : vector<8x32xbf16> to vector<8x8xbf16>
    %67 = vector.extract_strided_slice %16 {offsets = [0, 24], sizes = [8, 8], strides = [1, 1]} : vector<8x32xbf16> to vector<8x8xbf16>
    %68 = vector.extract_strided_slice %17 {offsets = [0, 24], sizes = [8, 8], strides = [1, 1]} : vector<8x32xbf16> to vector<8x8xbf16>
    %cst_26 = arith.constant dense<0.000000e+00> : vector<8x8xf32>
    %69 = tpu.matmul %66, %67, %cst_26 {dimension_numbers = #tpu.dot_dimension_numbers<[1], [1], [0], [0], [0, 0, 1, 0], [], []>} : vector<8x8xbf16>, vector<8x8xbf16>, vector<8x8xf32> -> vector<8x8xf32>
    %cst_27 = arith.constant dense<0xFF800000> : vector<8xf32>
    %70 = vector.multi_reduction <maximumf>, %69, %cst_27 [1] : vector<8x8xf32> to vector<8xf32>
    %71 = vector.shape_cast %70 : vector<8xf32> to vector<8x1xf32>
    %72 = vector.broadcast %71 : vector<8x1xf32> to vector<8x8xf32>
    %73 = arith.subf %69, %72 : vector<8x8xf32>
    %74 = math.exp %73 : vector<8x8xf32>
    %cst_28 = arith.constant dense<0.000000e+00> : vector<8xf32>
    %75 = vector.multi_reduction <add>, %74, %cst_28 [1] : vector<8x8xf32> to vector<8xf32>
    %76 = vector.shape_cast %75 : vector<8xf32> to vector<8x1xf32>
    %77 = arith.truncf %74 : vector<8x8xf32> to vector<8x8xbf16>
    %cst_29 = arith.constant dense<0.000000e+00> : vector<8x8xf32>
    %78 = tpu.matmul %77, %68, %cst_29 {dimension_numbers = #tpu.dot_dimension_numbers<[1], [0], [0], [1], [0, 0, 1, 1], [], []>} : vector<8x8xbf16>, vector<8x8xbf16>, vector<8x8xf32> -> vector<8x8xf32>
    %79 = tpu.reciprocal %76 {approx = true} : vector<8x1xf32> -> vector<8x1xf32>
    %80 = vector.broadcast %79 : vector<8x1xf32> to vector<8x8xf32>
    %81 = arith.mulf %78, %80 : vector<8x8xf32>
    %82 = tpu.concatenate %33, %49, %65, %81 in 1 : vector<8x8xf32>, vector<8x8xf32>, vector<8x8xf32>, vector<8x8xf32> -> vector<8x32xf32>
    %83 = arith.truncf %82 : vector<8x32xf32> to vector<8x32xbf16>
    %c0_30 = arith.constant 0 : index
    %c0_31 = arith.constant 0 : index
    %84 = vector.load %arg15[%c0_30, %c0_31] : memref<8x32xbf16, #tpu.memory_space<vmem>>, vector<8x32xbf16>
    tpu.vector_store %arg15[%c0_30, %c0_31], %83 {strides = array<i32>} : memref<8x32xbf16, #tpu.memory_space<vmem>>, vector<8x32xbf16>,
    %c0_32 = arith.constant 0 : index
    %c0_33 = arith.constant 0 : index
    %85 = vector.load %arg15[%c0_32, %c0_33] : memref<8x32xbf16, #tpu.memory_space<vmem>>, vector<8x32xbf16>
    %c0_34 = arith.constant 0 : index
    %c0_35 = arith.constant 0 : index
    %86 = vector.load %arg9[%c0_34, %c0_35] : memref<32x32xbf16, #tpu.memory_space<vmem>>, vector<32x32xbf16>
    %cst_36 = arith.constant dense<0.000000e+00> : vector<8x32xf32>
    %87 = tpu.matmul %85, %86, %cst_36 {dimension_numbers = #tpu.dot_dimension_numbers<[1], [0], [0], [1], [0, 0, 1, 1], [], []>} : vector<8x32xbf16>, vector<32x32xbf16>, vector<8x32xf32> -> vector<8x32xf32>
    %c0_37 = arith.constant 0 : index
    %c0_38 = arith.constant 0 : index
    %88 = vector.load %arg10[%c0_37, %c0_38] : memref<1x32xf32, #tpu.memory_space<vmem>>, vector<1x32xf32>
    %89 = vector.broadcast %88 : vector<1x32xf32> to vector<8x32xf32>
    %90 = arith.addf %87, %89 : vector<8x32xf32>
    %c0_39 = arith.constant 0 : index
    %c0_40 = arith.constant 0 : index
    %c0_41 = arith.constant 0 : index
    %91 = vector.load %arg11[%c0_39, %c0_40, %c0_41] : memref<1x8x32xf32, #tpu.memory_space<vmem>>, vector<1x8x32xf32>
    %92 = vector.shape_cast %91 : vector<1x8x32xf32> to vector<8x32xf32>
    %93 = vector.shape_cast %90 : vector<8x32xf32> to vector<1x8x32xf32>
    tpu.vector_store %arg11[%c0_39, %c0_40, %c0_41], %93 {strides = array<i32>} : memref<1x8x32xf32, #tpu.memory_space<vmem>>, vector<1x8x32xf32>,
    return
  }
  func.func @transform_0(%arg0: i32, %arg1: i32) -> (i32, i32, i32) {
    %c0_i32 = arith.constant 0 : i32
    %c0_i32_0 = arith.constant 0 : i32
    %c0_i32_1 = arith.constant 0 : i32
    return %arg0, %c0_i32, %c0_i32_0 : i32, i32, i32
  }
  func.func @transform_1(%arg0: i32, %arg1: i32) -> (i32, i32) {
    %c0_i32 = arith.constant 0 : i32
    %c0_i32_0 = arith.constant 0 : i32
    %c0_i32_1 = arith.constant 0 : i32
    return %c0_i32, %c0_i32_0 : i32, i32
  }
  func.func @transform_2(%arg0: i32, %arg1: i32) -> (i32, i32) {
    %c0_i32 = arith.constant 0 : i32
    %c0_i32_0 = arith.constant 0 : i32
    %c0_i32_1 = arith.constant 0 : i32
    return %c0_i32, %c0_i32_0 : i32, i32
  }
  func.func @transform_3(%arg0: i32, %arg1: i32) -> (i32, i32) {
    %c0_i32 = arith.constant 0 : i32
    %c0_i32_0 = arith.constant 0 : i32
    %c0_i32_1 = arith.constant 0 : i32
    return %c0_i32, %c0_i32_0 : i32, i32
  }
  func.func @transform_4(%arg0: i32, %arg1: i32) -> (i32, i32) {
    %c0_i32 = arith.constant 0 : i32
    %c0_i32_0 = arith.constant 0 : i32
    %c0_i32_1 = arith.constant 0 : i32
    return %c0_i32, %c0_i32_0 : i32, i32
  }
  func.func @transform_5(%arg0: i32, %arg1: i32) -> (i32, i32) {
    %c0_i32 = arith.constant 0 : i32
    %c0_i32_0 = arith.constant 0 : i32
    %c0_i32_1 = arith.constant 0 : i32
    return %c0_i32, %c0_i32_0 : i32, i32
  }
  func.func @transform_6(%arg0: i32, %arg1: i32) -> (i32, i32) {
    %c0_i32 = arith.constant 0 : i32
    %c0_i32_0 = arith.constant 0 : i32
    %c0_i32_1 = arith.constant 0 : i32
    return %c0_i32, %c0_i32_0 : i32, i32
  }
  func.func @transform_7(%arg0: i32, %arg1: i32) -> (i32, i32) {
    %c0_i32 = arith.constant 0 : i32
    %c0_i32_0 = arith.constant 0 : i32
    %c0_i32_1 = arith.constant 0 : i32
    return %c0_i32, %c0_i32_0 : i32, i32
  }
  func.func @transform_8(%arg0: i32, %arg1: i32) -> (i32, i32) {
    %c0_i32 = arith.constant 0 : i32
    %c0_i32_0 = arith.constant 0 : i32
    %c0_i32_1 = arith.constant 0 : i32
    return %c0_i32, %c0_i32_0 : i32, i32
  }
  func.func @transform_9(%arg0: i32, %arg1: i32) -> (i32, i32, i32) {
    %c0_i32 = arith.constant 0 : i32
    %c0_i32_0 = arith.constant 0 : i32
    return %arg0, %arg1, %c0_i32 : i32, i32, i32
  }
}

</mosaic_0001>

<bundles_post_ra>
// kernel: tpu_custom_call.1
= control target key start
LH: loop header
LB: loop body
LE: loop exit
PB: predicated region body
PF: predicated region fallthrough
CT: control target
= control target key end

     0   :  { %s1712_s0 = inlined_call_operand.hbm [shape: bf16[2,8,32], index: 0, kind: input, shape index: {}]   ;;  %s1713_s1 = inlined_call_operand.hbm [shape: bf16[32,32], index: 1, kind: input, shape index: {}]   ;;  %s1714_s2 = inlined_call_operand.vmem [shape: f32[1,32], index: 2, kind: input, shape index: {}]   ;;  %s1715_s3 = inlined_call_operand.hbm [shape: bf16[32,32], index: 3, kind: input, shape index: {}]   ;;  %s1716_s4 = inlined_call_operand.vmem [shape: f32[1,32], index: 4, kind: input, shape index: {}]   ;;  %s1717_s5 = inlined_call_operand.hbm [shape: bf16[32,32], index: 5, kind: input, shape index: {}]   ;;  %s1718_s6 = inlined_call_operand.vmem [shape: f32[1,32], index: 6, kind: input, shape index: {}]   ;;  %s1719_s7 = inlined_call_operand.hbm [shape: bf16[32,32], index: 7, kind: input, shape index: {}]   ;;  %s1720_s8 = inlined_call_operand.vmem [shape: f32[1,32], index: 8, kind: input, shape index: {}]   ;;  %s1721_s9 = inlined_call_operand.hbm [shape: f32[2,8,32], index: 9, kind: output, shape index: {}]  }
   0x1   :  { %1723 = sst [smem:[#allocation20_spill]] %s1713_s1 }
   0x2   :  { %1724 = sst [smem:[#allocation21_spill]] %s1715_s3 }
   0x3   :  { %1725 = sst [smem:[#allocation22_spill]] %s1717_s5 }
   0x4   :  { %1726 = sst [smem:[#allocation23_spill]] %s1719_s7 }
   0x5   :  { %14 = vsyncpa [#allocation7], 0 }
   0x6   :  { %16 = vsyncpa [#allocation7 + $0x1], 0 }
   0x7   :  { %17 = vsyncpa [#allocation10], 0 }
   0x8   :  { %18 = vsyncpa [#allocation13], 0 }
   0x9   :  { %19 = vsyncpa [#allocation8], 0 }
   0xa   :  { %21 = vsyncpa [#allocation8 + $0x1], 0  ;;  %s1490_s30 = smov 0   ;;  %s1492_s10 = smov 0  }
   0xb   :  { %s1494_s11 = smov 0   ;;  %s1496_s12 = smov 0  }
   0xc   :  { %s1498_s13 = smov 0   ;;  %s1500_s14 = smov 0  }
   0xd LB: > { %s1722_s15 = sadd.s32 4294967295, %s1426_s14   ;;  %p984_p0 = scmp.ge.s32.totalorder %s1426_s14, 1  ;;  %s1426_s14 = sphi %s1500_s14, %s27_s14   ;;  %s1422_s13 = sphi %s1498_s13, %s1742_s13   ;;  %s1418_s12 = sphi %s1496_s12, %s1741_s12   ;;  %s1414_s11 = sphi %s1494_s11, %s1740_s11   ;;  %s1410_s10 = sphi %s1492_s10, %s1739_s10   ;;  %s1406_s30 = sphi %s1490_s30, %s1738_s30  }
   0xe   : > { %p1524_p1 = scmp.eq.s32.totalorder %s1722_s15, 0  ;;  %p266_p2 = scmp.lt.s32.totalorder %s1426_s14, 3 }
   0xf   : > { %s1728_s1 = sld [smem:[#allocation20_spill]]  ;;  %s1428_s21 = smov [#allocation9]  }
  0x10   : > { %p1532_p3 = pnand %p984_p0, %p266_p2  ;;  %s279_s22 = sshll.u32 %s1428_s21, 4  ;;  %s280_s22 = int_to_ptr.vmem [resolvable:$true] %s279_s22 }
  0x11   : > { %p989_p6 = scmp.ge.s32.totalorder %s1426_s14, 2  ;;  %s1731_s5 = sld [smem:[#allocation22_spill]] }
  0x12   : > { %p1075_p4 = pneg %p1532_p3  ;;  %s1429_s27 = smov 64  }
  0x13   : > { %s1430_s28 = smov 4   ;;  %s1431_s29 = smov [#allocation12]  }
  0x14   : > { %p1540_p5 = pnand %p1075_p4, %p1524_p1  ;;  %s313_s17 = sshll.u32 %s1431_s29, 4  ;;  %s314_s17 = int_to_ptr.vmem [resolvable:$true] %s313_s17 }
  0x15   : > { %s277_s19 = sshll.u32 %s1728_s1, 4  ;;  %s1732_s3 = sld [smem:[#allocation21_spill]]  ;;  %s278_s19 = int_to_ptr.hbm [resolvable:$true] %s277_s19 }
  0x16   : > { %1078 = dma.hbm_to_vmem [thread:$0]  (!%p1540_p5), %s278_s19, 256, %s280_s22, [#allocation10], %s1429_s27, %s1429_s27, %s1430_s28  }
  0x17   : > { %s311_s26 = sshll.u32 %s1731_s5, 4  ;;  %s1733_s7 = sld [smem:[#allocation23_spill]]  ;;  %s312_s26 = int_to_ptr.hbm [resolvable:$true] %s311_s26 }
  0x18   : > { %1084 = dma.hbm_to_vmem [thread:$0]  (!%p1540_p5), %s312_s26, 256, %s314_s17, [#allocation13], %s1429_s27, %s1429_s27, %s1430_s28  }
  0x19   : > { %s1432_s22 = smov [#allocation11]   ;;  %s1433_s18 = smov [#allocation14]  }
  0x1a   : > { %s296_s29 = sshll.u32 %s1432_s22, 4  ;;  %s330_s21 = sshll.u32 %s1433_s18, 4  ;;  %s297_s29 = int_to_ptr.vmem [resolvable:$true] %s296_s29  ;;  %s331_s21 = int_to_ptr.vmem [resolvable:$true] %s330_s21 }
  0x1b   : > { %s294_s15 = sshll.u32 %s1732_s3, 4  ;;  %s39_s26 = sadd.s32 1, %s1422_s13  ;;  %s295_s15 = int_to_ptr.hbm [resolvable:$true] %s294_s15 }
  0x1c   : > { %1081 = dma.hbm_to_vmem [thread:$0]  (!%p1540_p5), %s295_s15, 256, %s297_s29, [#allocation10], %s1429_s27, %s1429_s27, %s1430_s28  }
  0x1d   : > { %s328_s19 = sshll.u32 %s1733_s7, 4  ;;  %s983_s17 = sadd.s32 4294967294, %s1426_s14   ;;  %s329_s19 = int_to_ptr.hbm [resolvable:$true] %s328_s19 }
  0x1e   : > { %1087 = dma.hbm_to_vmem [thread:$0]  (!%p1540_p5), %s329_s19, 256, %s331_s21, [#allocation13], %s1429_s27, %s1429_s27, %s1430_s28  }
  0x1f   : > { %p41_p7 = scmp.ge.s32.totalorder %s39_s26, 2  ;;  %s46_s24 = sadd.s32 1, %s1414_s11 }
  0x20   : > { %p53_p8 = scmp.ne.s32.totalorder %s1414_s11, %s1410_s10  ;;  %p54_p9 = scmp.eq.s32.totalorder %s1426_s14, 0 }
  0x21   : > { %s1744_s26 = smov (%p41_p7, %s39_s26), 0  ;;  %p59_p10 = scmp.ne.s32.totalorder %s1410_s10, %s1406_s30 }
  0x22   : > { %s43_s15 = ssub.s32 %s1422_s13, %s1744_s26  ;;  %s1734_s25 = sadd.s32 4294967295, %s1426_s14  }
  0x23   : > { %p253_p11 = scmp.eq.s32.totalorder %s1734_s25, 1  ;;  %p44_p12 = scmp.eq.s32.totalorder %s43_s15, 0 }
  0x24   : > { %p1578_p13 = por %p1524_p1, %p59_p10  ;;  %p259_p2 = scmp.eq.s32.totalorder %s983_s17, 1 }
  0x25   : > { %p1582_p0 = por %p253_p11, %p53_p8  ;;  %p55_p4 = por %p54_p9, %p53_p8 }
  0x26   : > { %s1587_s28 = scalar_select %p44_p12, %s1414_s11, %s46_s24  }
  0x27   : > { %p1589_p5 = por %p259_p2, %p59_p10  ;;  %s347_s22 = sand.u32 1, %s1414_s11  }
  0x28   : > { %s991_s29 = sshll.u32 %s1422_s13, 2  ;;  %p1100_p7 = scmp.lt.s32.totalorder %s1426_s14, 2 }
  0x29   : > { %s990_s18 = sshll.u32 %s347_s22, 2  ;;  %s355_s25 = scalar_lea.hbm %s1712_s0, %s991_s29 }
  0x2a   : > { %s357_s1 = sshll.u32 %s355_s25, 4  ;;  %s351_s3 = scalar_lea.vmem [#allocation6], %s990_s18  ;;  %s358_s1 = int_to_ptr.hbm [resolvable:$true] %s357_s1 }
  0x2b   : > { %s359_s5 = sshll.u32 %s351_s3, 4  ;;  %p1089_p11 = pnand %p1100_p7, %p55_p4  ;;  %s360_s5 = int_to_ptr.vmem [resolvable:$true] %s359_s5 }
  0x2c   : > { %s348_s17 = scalar_lea.sflag [#allocation7], %s347_s22  ;;  %368 = sbr.rel (%p1532_p3) target bundleno = 993 (0x3e1), region = 56 }
  0x2d   : > { %1091 = dma.hbm_to_vmem [thread:$0]  (!%p1089_p11), %s358_s1, 64, %s360_s5, %s348_s17  }
  0x2e   : > { %s1602_s24 = sand.u32 (!%p1532_p3), 1, %s1410_s10  }
  0x2f   : > { %s993_s7 = sshll.u32 (!%p1532_p3), %s1602_s24, 2  ;;  %s371_s21 = scalar_lea.sflag (!%p1532_p3), [#allocation7], %s1602_s24 }
  0x30   : > { %s374_s29 = scalar_lea.vmem (!%p1532_p3), [#allocation6], %s993_s7 }
  0x31   : > { %1389 = dma.done.wait (%p1578_p13), %s371_s21, 64  }
  0x32   : > { %1391 = vsyncadd (%p1578_p13), %s371_s21, 4294967232 }
  0x33   : > { %1393 = dma.done.wait (%p1524_p1), [#allocation10], 512  }
  0x34   : > { %1395 = vsyncadd (%p1524_p1), [#allocation10], 4294966784 }
  0x35   : > { %1397 = dma.done.wait (%p1524_p1), [#allocation13], 512  }
  0x36   : > { %1399 = vsyncadd (%p1524_p1), [#allocation13], 4294966784  ;;  %v1048_v0 = vld [vmem:[#allocation11 + $0x8] sm:$0xff]  ;;  %v1052_v1 = vld [vmem:[#allocation9 + $0x8] sm:$0xff]  ;;  %vm456_vm0 = vcmask 261120   ;;  %vm507_vm1 = vcmask 257024  }
  0x37   : > { %v1047_v2 = vld [vmem:[#allocation11] sm:$0xff]  ;;  %466 = vmatpush.bf16.msra.mxu0 %v1048_v0  ;;  %547 = vmatpush.bf16.msra.mxu2 %v1052_v1  ;;  %v1051_v3 = vld [vmem:[#allocation9] sm:$0xff]  ;;  %v435_v4 = vld [vmem:[%s374_s29] sm:$0xf]  ;;  %vm560_vm2 = vcmask 64512   ;;  %s1434_s16 = smov 112  }
  0x38   : > { %v516_v5 = vld [vmem:[%s374_s29] sm:$0xf]  ;;  %v1166_v6 = vld [vmem:[%s1716_s4] ss:$0 sm:$0xff]  ;;  %v1049_v10 = vld [vmem:[#allocation12] sm:$0xff]  ;;  %s1435_s20 = smov 120  }
  0x39   : > { %v1050_v7 = vld [vmem:[#allocation12 + $0x8] sm:$0xff]  ;;  %s1436_s23 = smov 104   ;;  %vm593_vm3 = vcmask 1043456   ;;  %s1437_s15 = smov 8   ;;  %vm802_vm4 = vcmask 130048   ;;  %vm804_vm5 = vcmask 195584  }
  0x3a   : > { %499 = vmatpush.bf16.msra.mxu1 %v1050_v7  ;;  %v1167_v12 = vld [vmem:[%s1714_s2] ss:$0 sm:$0xff]  ;;  %s1438_s25 = smov 16   ;;  %s1439_s17 = smov 24  }
  0x3b   : > { %467 = vmatpush.bf16.msra.mxu0 %v1047_v2  ;;  %548 = vmatpush.bf16.msra.mxu2 %v1051_v3  ;;  %v1168_v25 = vld [vmem:[%s1718_s6] ss:$0 sm:$0xff]  ;;  %s1044_s21 = sshll.u32 %s1418_s12, 3  ;;  %s998_s29 = sshll.u32 %s1602_s24, 3 }
  0x3c   : > { %s858_s5 = scalar_lea.hbm %s1721_s9, %s1044_s21  ;;  %s847_s12 = scalar_lea.sflag [#allocation8], %s1602_s24 }
  0x3d   : > { %s862_s22 = sshll.u32 %s858_s5, 4  ;;  %s1356_s21 = scalar_lea.hbm %s1721_s9, 16  ;;  %s863_s22 = int_to_ptr.hbm [resolvable:$true] %s862_s22 }
  0x3e   : > { %1007 = vmatmul.msk.bf16.vlgmr.msra.gmra.mxu0 %vm456_vm0, %v435_v4  ;;  %1025 = vmatmul.msk.bf16.vlgmr.msra.gmra.mxu2 %vm456_vm0, %v516_v5  ;;  %s1350_s18 = sshra.s32 %s863_s22, 4  ;;  %s1351_s18 = int_to_ptr.hbm [resolvable:$true] %s1350_s18 }
  0x3f   : > { %500 = vmatpush.bf16.msra.mxu1 %v1049_v10  ;;  %p1357_p9 = scmp.lt.s32.totalorder %s1351_s18, %s1721_s9 }
  0x42   : > { %1016 = vmatmul.msk.bf16.vlgmr.msra.gmra.mxu1 %vm456_vm0, %v435_v4 }
  0xbb   : > { %v469_v8 = vpop.f32.mrf.mxu0 }
  0xbc   : > { %v470_v9 = vadd.f32 %v1166_v6, %v469_v8 }
  0xbe   : > { %v506_v11 = vpack.c.bf16 %v470_v9, %v470_v9 }
  0xbf   : > { %v502_v30 = vpop.f32.mrf.mxu1 }
  0xc0   : > { %508 = vst.msk [vmem:[#allocation2] sm:$0xf] %vm507_vm1, %v506_v11  ;;  %v503_v31 = vadd.f32 %v1168_v25, %v502_v30 }
  0xc1   : > { %v550_v13 = vpop.f32.mrf.mxu2 }
  0xc2   : > { %v551_v14 = vadd.f32 %v1167_v12, %v550_v13  ;;  %v509_v32 = vpack.c.bf16 %v503_v31, %v503_v31 }
  0xc3   : > { %v471_v15 = vpop.f32.mrf.mxu0 }
  0xc4   : > { %v554_v16 = vpack.c.bf16 %v551_v14, %v551_v14  ;;  %510 = vst.msk [vmem:[#allocation3] sm:$0xf] %vm507_vm1, %v509_v32 }
  0xc6   : > { %556 = vst.msk [vmem:[#allocation4] sm:$0xf] %vm507_vm1, %v554_v16 }
  0xc7   : > { %v558_v17 = vld [vmem:[#allocation2] sm:$0xf]  ;;  %v504_v37 = vpop.f32.mrf.mxu1 }
  0xc8   : > { %v565_v18 = vsel %vm560_vm2, %v558_v17, 0  ;;  %v618_v19 = vunpack.c.l.b16 %v558_v17 }
  0xc9   : > { %v552_v20 = vpop.f32.mrf.mxu2  ;;  %574 = vmatpush.bf16.xpose.msra.mxu3 %v565_v18 }
  0xca   : > { %v619_v21 = vpack.c.b16 %v618_v19, %v618_v19 }
  0xcb   : > { %v559_v38 = vld [vmem:[#allocation3] sm:$0xf] }
  0xcc   : > { %679 = vrot.lane.b32.xlu1 %v619_v21, %s1434_s16  ;;  %620 = vrot.lane.b32.xlu0 %v619_v21, %s1435_s20  ;;  %v595_v39 = vsel %vm593_vm3, %v559_v38, 0  ;;  %v652_v40 = vunpack.c.l.b16 %v559_v38  ;;  %v1054_v38 = vld [vmem:[#allocation14 + $0x8] sm:$0xff] }
  0xcd   : > { %v557_v22 = vld [vmem:[#allocation4] sm:$0xf]  ;;  %604 = vmatpush.bf16.msrb.mxu0 %v595_v39 }
  0xce   : > { %v613_v23 = vunpack.c.l.b16 %v557_v22  ;;  %v653_v41 = vpack.c.b16 %v652_v40, %v652_v40  ;;  %v1053_v39 = vld [vmem:[#allocation14] sm:$0xff] }
  0xd0   : > { %1026 = vmatmul.msk.bf16.vlgmr.msra.gmra.mxu3 %vm560_vm2, %v557_v22  ;;  %v614_v24 = vpack.c.b16 %v613_v23, %v613_v23 }
  0xd2   : > { %677 = vrot.lane.b32.xlu2 %v614_v24, %s1434_s16 }
  0xd4   : > { %735 = vrot.lane.b32.xlu1 %v619_v21, %s1436_s23  ;;  %615 = vrot.lane.b32.xlu0 %v614_v24, %s1435_s20 }
  0xda   : > { %733 = vrot.lane.b32.xlu2 %v614_v24, %s1436_s23 }
  0xe2   : > { %654 = vrot.lane.b32.xlu2 %v653_v41, %s1435_s20  ;;  %s429_s20 = scalar_lea.vmem [#allocation15], %s998_s29 }
 0x12c   : > { %v678_v33 = vpop.permute.xlu2 %677 }
 0x134   : > { %v734_v44 = vpop.permute.xlu2 %733 }
 0x13c   : > { %v655_v54 = vpop.permute.xlu2 %654 }
 0x13d   : > { %v660_v55 = vsel %vm593_vm3, %v655_v54, 0 }
 0x13e   : > { %v680_v26 = vpop.permute.xlu1 %679  ;;  %v621_v27 = vpop.permute.xlu0 %620  ;;  %669 = vmatpush.bf16.msrb.mxu2 %v660_v55 }
 0x13f   : > { %v626_v28 = vsel %vm560_vm2, %v621_v27, 0  ;;  %v685_v29 = vsel %vm560_vm2, %v680_v26, 0 }
 0x140   : > { %635 = vmatpush.bf16.xpose.msrb.mxu1 %v626_v28  ;;  %694 = vmatpush.bf16.xpose.msrb.mxu3 %v685_v29 }
 0x146   : > { %v736_v34 = vpop.permute.xlu1 %735  ;;  %v616_v35 = vpop.permute.xlu0 %615 }
 0x147   : > { %v741_v36 = vsel %vm560_vm2, %v736_v34, 0  ;;  %1028 = vmatmul.msk.bf16.vlgmr.msrb.gmra.mxu1 %vm560_vm2, %v616_v35  ;;  %1030 = vmatmul.msk.bf16.vlgmr.msrb.gmra.mxu3 %vm560_vm2, %v678_v33 }
 0x148   : > { %750 = vmatpush.bf16.xpose.msra.mxu1 %v741_v36  ;;  %838 = vmatpush.bf16.msra.mxu3 %v1054_v38 }
 0x14c   : > { %839 = vmatpush.bf16.msra.mxu3 %v1053_v39 }
 0x153   : > { %v576_v42 = vpop.f32.mrf.mxu3 }
 0x154   : > { %v580_v43 = vsel %vm560_vm2, %v576_v42, -inf }
 0x155   : > { %581 = vmax.xlane.f32.xlu1 %v580_v43 }
 0x157   : > { %1032 = vmatmul.msk.bf16.vlgmr.msra.gmra.mxu1 %vm560_vm2, %v734_v44 }
 0x15b   : > { %v578_v45 = vpop.f32.mrf.mxu3 }
 0x16e   : > { %766 = vrot.lane.b32.xlu1 %v653_v41, %s1436_s23  ;;  %s860_s23 = sshll.u32 %s429_s20, 4  ;;  %s861_s23 = int_to_ptr.vmem [resolvable:$true] %s860_s23 }
 0x1c4   : > { %v637_v46 = vpop.f32.mrf.mxu1 }
 0x1c5   : > { %v641_v47 = vsel %vm560_vm2, %v637_v46, -inf }
 0x1c6   : > { %642 = vmax.xlane.f32.xlu0 %v641_v47 }
 0x1c8   : > { %v582_v48 = vpop.xlane.xlu1 %581 }
 0x1c9   : > { %v583_v49 = vsub.f32 %v576_v42, %v582_v48 }
 0x1ca   : > { %v696_v50 = vpop.f32.mrf.mxu3 }
 0x1cb   : > { %v584_v51 = vmul.f32 1.442695, %v583_v49  ;;  %v700_v53 = vsel %vm560_vm2, %v696_v50, -inf }
 0x1cc   : > { %v639_v52 = vpop.f32.mrf.mxu1 }
 0x1cd   : > { %1170 = vpow2.f32 %v584_v51  ;;  %v1169_v51 = vld [vmem:[%s1720_s8] ss:$0 sm:$0xff] }
 0x1ce   : > { %701 = vmax.xlane.f32.xlu0 %v700_v53 }
 0x1d2   : > { %v698_v56 = vpop.f32.mrf.mxu3 }
 0x1d3   : > { %v1171_v57 = vpop.eup %1170 }
 0x1d4   : > { %v752_v58 = vpop.f32.mrf.mxu1  ;;  %v586_v59 = vsel %vm560_vm2, %v1171_v57, 0.0  ;;  %v589_v60 = vpack.c.bf16 %v1171_v57, %v1171_v57 }
 0x1d5   : > { %587 = vadd.xlane.f32.xlu1 %v586_v59  ;;  %v756_v61 = vsel %vm560_vm2, %v752_v58, -inf }
 0x1d6   : > { %757 = vmax.xlane.f32.xlu2 %v756_v61  ;;  %1027 = vmatmul.msk.bf16.vlgmr.msrb.gmra.mxu0 %vm560_vm2, %v589_v60 }
 0x1dc   : > { %v754_v62 = vpop.f32.mrf.mxu1 }
 0x1e0   : > { %v767_v63 = vpop.permute.xlu1 %766 }
 0x1e1   : > { %v772_v0 = vsel %vm593_vm3, %v767_v63, 0 }
 0x1e2   : > { %781 = vmatpush.bf16.msra.mxu2 %v772_v0 }
 0x1ee   : > { %710 = vrot.lane.b32.xlu2 %v653_v41, %s1434_s16 }
 0x239   : > { %v643_v1 = vpop.xlane.xlu0 %642 }
 0x23a   : > { %v644_v2 = vsub.f32 %v637_v46, %v643_v1 }
 0x23c   : > { %v645_v3 = vmul.f32 1.442695, %v644_v2 }
 0x23e   : > { %1172 = vpow2.f32 %v645_v3 }
 0x241   : > { %v702_v4 = vpop.xlane.xlu0 %701 }
 0x242   : > { %v703_v5 = vsub.f32 %v696_v50, %v702_v4 }
 0x244   : > { %v1173_v6 = vpop.eup %1172  ;;  %v704_v7 = vmul.f32 1.442695, %v703_v5 }
 0x245   : > { %v647_v8 = vsel %vm560_vm2, %v1173_v6, 0.0  ;;  %v650_v9 = vpack.c.bf16 %v1173_v6, %v1173_v6 }
 0x246   : > { %1174 = vpow2.f32 %v704_v7  ;;  %648 = vadd.xlane.f32.xlu0 %v647_v8 }
 0x247   : > { %1029 = vmatmul.msk.bf16.vlgmr.msrb.gmra.mxu2 %vm560_vm2, %v650_v9 }
 0x248   : > { %v588_v40 = vpop.xlane.xlu1 %587 }
 0x249   : > { %v758_v10 = vpop.xlane.xlu2 %757 }
 0x24a   : > { %v759_v11 = vsub.f32 %v752_v58, %v758_v10 }
 0x24c   : > { %v1175_v12 = vpop.eup %1174  ;;  %v760_v13 = vmul.f32 1.442695, %v759_v11 }
 0x24d   : > { %v706_v14 = vsel %vm560_vm2, %v1175_v12, 0.0  ;;  %v709_v19 = vpack.c.bf16 %v1175_v12, %v1175_v12 }
 0x24e   : > { %1176 = vpow2.f32 %v760_v13  ;;  %707 = vadd.xlane.f32.xlu0 %v706_v14 }
 0x251   : > { %v711_v15 = vpop.permute.xlu2 %710 }
 0x252   : > { %v716_v16 = vsel %vm593_vm3, %v711_v15, 0 }
 0x253   : > { %v606_v17 = vpop.f32.mrf.mxu0  ;;  %725 = vmatpush.bf16.msra.mxu0 %v716_v16 }
 0x254   : > { %v1177_v18 = vpop.eup %1176 }
 0x255   : > { %v765_v20 = vpack.c.bf16 %v1177_v18, %v1177_v18  ;;  %v762_v21 = vsel %vm560_vm2, %v1177_v18, 0.0 }
 0x256   : > { %1031 = vmatmul.msk.bf16.vlgmr.msra.gmra.mxu0 %vm560_vm2, %v709_v19  ;;  %763 = vadd.xlane.f32.xlu0 %v762_v21 }
 0x257   : > { %1033 = vmatmul.msk.bf16.vlgmr.msra.gmra.mxu2 %vm560_vm2, %v765_v20 }
 0x25b   : > { %v608_v22 = vpop.f32.mrf.mxu0 }
 0x2b9   : > { %v649_v23 = vpop.xlane.xlu0 %648 }
 0x2ba   : > { %1178 = vrcp.f32 %v649_v23 }
 0x2c0   : > { %v1179_v25 = vpop.eup %1178 }
 0x2c1   : > { %v708_v24 = vpop.xlane.xlu0 %707 }
 0x2c2   : > { %1180 = vrcp.f32 %v708_v24 }
 0x2c8   : > { %v1181_v30 = vpop.eup %1180 }
 0x2c9   : > { %v764_v28 = vpop.xlane.xlu0 %763 }
 0x2ca   : > { %v671_v26 = vpop.f32.mrf.mxu2  ;;  %1182 = vrcp.f32 %v764_v28 }
 0x2cb   : > { %v676_v27 = vmul.f32 %v1179_v25, %v671_v26  ;;  %1184 = vrcp.f32 %v588_v40 }
 0x2cd   : > { %790 = vrot.lane.b32.xlu2 %v676_v27, %s1437_s15  ;;  %s1352_s15 = scalar_lea.hbm %s1351_s18, 8 }
 0x2ce   : > { %p1353_p1 = scmp.ne.s32.totalorder %s1351_s18, %s1352_s15  ;;  %p1358_p10 = scmp.lt.s32.totalorder %s1356_s21, %s1352_s15 }
 0x2d0   : > { %v1183_v33 = vpop.eup %1182  ;;  %p1354_p3 = pnand %p1353_p1, %p1582_p0  ;;  %p1359_p12 = por %p1358_p10, %p1357_p9 }
 0x2d1   : > { %v1185_v42 = vpop.eup %1184 }
 0x2d2   : > { %v673_v29 = vpop.f32.mrf.mxu2  ;;  %v611_v43 = vmul.f32 %v1185_v42, %v606_v17  ;;  %p1355_p8 = pneg %p1354_p3 }
 0x2d3   : > { %v727_v31 = vpop.f32.mrf.mxu0 }
 0x2d4   : > { %v732_v32 = vmul.f32 %v1181_v30, %v727_v31  ;;  %p1360_p13 = pnand %p1359_p12, %p1355_p8 }
 0x2d6   : > { %794 = vrot.lane.b32.xlu0 %v732_v32, %s1438_s25 }
 0x2da   : > { %v783_v34 = vpop.f32.mrf.mxu2 }
 0x2db   : > { %v788_v35 = vmul.f32 %v1183_v33, %v783_v34  ;;  %v729_v36 = vpop.f32.mrf.mxu0 }
 0x2dd   : > { %798 = vrot.lane.b32.xlu2 %v788_v35, %s1439_s17 }
 0x2e2   : > { %v785_v37 = vpop.f32.mrf.mxu2 }
 0x327   : > { %v791_v41 = vpop.permute.xlu2 %790 }
 0x328   : > { %v801_v44 = vsel %vm560_vm2, %v611_v43, %v791_v41 }
 0x337   : > { %v799_v46 = vpop.permute.xlu2 %798 }
 0x348   : > { %v795_v45 = vpop.permute.xlu0 %794 }
 0x349   : > { %v803_v47 = vsel %vm802_vm4, %v801_v44, %v795_v45 }
 0x34a   : > { %v805_v48 = vsel %vm804_vm5, %v803_v47, %v799_v46 }
 0x34b   : > { %v806_v49 = vpack.c.bf16 %v805_v48, %v805_v48 }
 0x34d   : > { %807 = vst.msk [vmem:[#allocation5] sm:$0xf] %vm507_vm1, %v806_v49 }
 0x354   : > { %v808_v50 = vld [vmem:[#allocation5] sm:$0xf] }
 0x355   : > { %1042 = vmatmul.msk.bf16.vlgmr.msra.gmra.mxu3 %vm456_vm0, %v808_v50 }
 0x3d8   : > { %v841_v52 = vpop.f32.mrf.mxu3 }
 0x3d9   : > { %v842_v53 = vadd.f32 %v1169_v51, %v841_v52 }
 0x3db   : > { %845 = vst.msk [vmem:[%s429_s20] sm:$0xff] %vm456_vm0, %v842_v53 }
 0x3dc   : > { %1363 = shalt.err (!%p1360_p13)
}
 0x3dd   : > { %1073 = dma.vmem_to_hbm [thread:$0]  (%p1582_p0), %s861_s23, 128, %s863_s22, %s847_s12  }
 0x3e0   : > { %v843_v54 = vpop.f32.mrf.mxu3 }
 0x3e1 PF: > { %s874_s24 = sand.u32 1, %s1406_s30   ;;  %p1093_p2 = pnand %p989_p6, %p1589_p5 }
 0x3e2   : > { %s875_s3 = scalar_lea.sflag [#allocation8], %s874_s24 }
 0x3e3   : > { %p1094_p4 = pneg %p1093_p2 }
 0x3e5   : > { %1401 = dma.done.wait (%p1094_p4), %s875_s3, 128  }
 0x3e6   : > { %1403 = vsyncadd (%p1094_p4), %s875_s3, 4294967168  ;;  %s27_s14 = sadd.s32 1, %s1426_s14   ;;  %s1738_s30 = smov %s1410_s10 }
 0x3e7   : > { %p24_p7 = scmp.ge.s32.totalorder %s27_s14, 4   ;;  %s1739_s10 = smov %s1414_s11 }
 0x3e8   : > { %s1740_s11 = smov %s1587_s28  ;;  %s1741_s12 = smov %s1422_s13 }
 0x3e9   : > { %s1742_s13 = smov %s1744_s26  ;;  %26 = sbr.rel (!%p24_p7) target bundleno = 13 (0xd), region = 122 }
 0x3ee   :  { %881 = vsyncpa [#allocation7], 1 }
 0x3ef   :  { %883 = vsyncpa [#allocation7 + $0x1], 1 }
 0x3f0   :  { %884 = vsyncpa [#allocation10], 1 }
 0x3f1   :  { %885 = vsyncpa [#allocation13], 1 }
 0x3f2   :  { %886 = vsyncpa [#allocation8], 1 }
 0x3f3   :  { %888 = vsyncpa [#allocation8 + $0x1], 1 }

// kernel: tpu_custom_call.1
= control target key start
LH: loop header
LB: loop body
LE: loop exit
PB: predicated region body
PF: predicated region fallthrough
CT: control target
= control target key end

     0   :  { %s1712_s0 = inlined_call_operand.hbm [shape: bf16[2,8,32], index: 0, kind: input, shape index: {}]   ;;  %s1713_s1 = inlined_call_operand.hbm [shape: bf16[32,32], index: 1, kind: input, shape index: {}]   ;;  %s1714_s2 = inlined_call_operand.vmem [shape: f32[1,32], index: 2, kind: input, shape index: {}]   ;;  %s1715_s3 = inlined_call_operand.hbm [shape: bf16[32,32], index: 3, kind: input, shape index: {}]   ;;  %s1716_s4 = inlined_call_operand.vmem [shape: f32[1,32], index: 4, kind: input, shape index: {}]   ;;  %s1717_s5 = inlined_call_operand.hbm [shape: bf16[32,32], index: 5, kind: input, shape index: {}]   ;;  %s1718_s6 = inlined_call_operand.vmem [shape: f32[1,32], index: 6, kind: input, shape index: {}]   ;;  %s1719_s7 = inlined_call_operand.hbm [shape: bf16[32,32], index: 7, kind: input, shape index: {}]   ;;  %s1720_s8 = inlined_call_operand.vmem [shape: f32[1,32], index: 8, kind: input, shape index: {}]   ;;  %s1721_s9 = inlined_call_operand.hbm [shape: f32[2,8,32], index: 9, kind: output, shape index: {}]  }
   0x1   :  { %1723 = sst [smem:[#allocation20_spill]] %s1713_s1 }
   0x2   :  { %1724 = sst [smem:[#allocation21_spill]] %s1715_s3 }
   0x3   :  { %1725 = sst [smem:[#allocation22_spill]] %s1717_s5 }
   0x4   :  { %1726 = sst [smem:[#allocation23_spill]] %s1719_s7 }
   0x5   :  { %14 = vsyncpa [#allocation7], 0 }
   0x6   :  { %16 = vsyncpa [#allocation7 + $0x1], 0 }
   0x7   :  { %17 = vsyncpa [#allocation10], 0 }
   0x8   :  { %18 = vsyncpa [#allocation13], 0 }
   0x9   :  { %19 = vsyncpa [#allocation8], 0 }
   0xa   :  { %21 = vsyncpa [#allocation8 + $0x1], 0  ;;  %s1490_s30 = smov 0   ;;  %s1492_s10 = smov 0  }
   0xb   :  { %s1494_s11 = smov 0   ;;  %s1496_s12 = smov 0  }
   0xc   :  { %s1498_s13 = smov 0   ;;  %s1500_s14 = smov 0  }
   0xd LB: > { %s1722_s15 = sadd.s32 4294967295, %s1426_s14   ;;  %p984_p0 = scmp.ge.s32.totalorder %s1426_s14, 1  ;;  %s1426_s14 = sphi %s1500_s14, %s27_s14   ;;  %s1422_s13 = sphi %s1498_s13, %s1742_s13   ;;  %s1418_s12 = sphi %s1496_s12, %s1741_s12   ;;  %s1414_s11 = sphi %s1494_s11, %s1740_s11   ;;  %s1410_s10 = sphi %s1492_s10, %s1739_s10   ;;  %s1406_s30 = sphi %s1490_s30, %s1738_s30  }
   0xe   : > { %p1524_p1 = scmp.eq.s32.totalorder %s1722_s15, 0  ;;  %p266_p2 = scmp.lt.s32.totalorder %s1426_s14, 3 }
   0xf   : > { %s1728_s1 = sld [smem:[#allocation20_spill]]  ;;  %s1428_s21 = smov [#allocation9]  }
  0x10   : > { %p1532_p3 = pnand %p984_p0, %p266_p2  ;;  %s279_s22 = sshll.u32 %s1428_s21, 4  ;;  %s280_s22 = int_to_ptr.vmem [resolvable:$true] %s279_s22 }
  0x11   : > { %p989_p6 = scmp.ge.s32.totalorder %s1426_s14, 2  ;;  %s1731_s5 = sld [smem:[#allocation22_spill]] }
  0x12   : > { %p1075_p4 = pneg %p1532_p3  ;;  %s1429_s27 = smov 64  }
  0x13   : > { %s1430_s28 = smov 4   ;;  %s1431_s29 = smov [#allocation12]  }
  0x14   : > { %p1540_p5 = pnand %p1075_p4, %p1524_p1  ;;  %s313_s17 = sshll.u32 %s1431_s29, 4  ;;  %s314_s17 = int_to_ptr.vmem [resolvable:$true] %s313_s17 }
  0x15   : > { %s277_s19 = sshll.u32 %s1728_s1, 4  ;;  %s1732_s3 = sld [smem:[#allocation21_spill]]  ;;  %s278_s19 = int_to_ptr.hbm [resolvable:$true] %s277_s19 }
  0x16   : > { %1078 = dma.hbm_to_vmem [thread:$0]  (!%p1540_p5), %s278_s19, 256, %s280_s22, [#allocation10], %s1429_s27, %s1429_s27, %s1430_s28  }
  0x17   : > { %s311_s26 = sshll.u32 %s1731_s5, 4  ;;  %s1733_s7 = sld [smem:[#allocation23_spill]]  ;;  %s312_s26 = int_to_ptr.hbm [resolvable:$true] %s311_s26 }
  0x18   : > { %1084 = dma.hbm_to_vmem [thread:$0]  (!%p1540_p5), %s312_s26, 256, %s314_s17, [#allocation13], %s1429_s27, %s1429_s27, %s1430_s28  }
  0x19   : > { %s1432_s22 = smov [#allocation11]   ;;  %s1433_s18 = smov [#allocation14]  }
  0x1a   : > { %s296_s29 = sshll.u32 %s1432_s22, 4  ;;  %s330_s21 = sshll.u32 %s1433_s18, 4  ;;  %s297_s29 = int_to_ptr.vmem [resolvable:$true] %s296_s29  ;;  %s331_s21 = int_to_ptr.vmem [resolvable:$true] %s330_s21 }
  0x1b   : > { %s294_s15 = sshll.u32 %s1732_s3, 4  ;;  %s39_s26 = sadd.s32 1, %s1422_s13  ;;  %s295_s15 = int_to_ptr.hbm [resolvable:$true] %s294_s15 }
  0x1c   : > { %1081 = dma.hbm_to_vmem [thread:$0]  (!%p1540_p5), %s295_s15, 256, %s297_s29, [#allocation10], %s1429_s27, %s1429_s27, %s1430_s28  }
  0x1d   : > { %s328_s19 = sshll.u32 %s1733_s7, 4  ;;  %s983_s17 = sadd.s32 4294967294, %s1426_s14   ;;  %s329_s19 = int_to_ptr.hbm [resolvable:$true] %s328_s19 }
  0x1e   : > { %1087 = dma.hbm_to_vmem [thread:$0]  (!%p1540_p5), %s329_s19, 256, %s331_s21, [#allocation13], %s1429_s27, %s1429_s27, %s1430_s28  }
  0x1f   : > { %p41_p7 = scmp.ge.s32.totalorder %s39_s26, 2  ;;  %s46_s24 = sadd.s32 1, %s1414_s11 }
  0x20   : > { %p53_p8 = scmp.ne.s32.totalorder %s1414_s11, %s1410_s10  ;;  %p54_p9 = scmp.eq.s32.totalorder %s1426_s14, 0 }
  0x21   : > { %s1744_s26 = smov (%p41_p7, %s39_s26), 0  ;;  %p59_p10 = scmp.ne.s32.totalorder %s1410_s10, %s1406_s30 }
  0x22   : > { %s43_s15 = ssub.s32 %s1422_s13, %s1744_s26  ;;  %s1734_s25 = sadd.s32 4294967295, %s1426_s14  }
  0x23   : > { %p253_p11 = scmp.eq.s32.totalorder %s1734_s25, 1  ;;  %p44_p12 = scmp.eq.s32.totalorder %s43_s15, 0 }
  0x24   : > { %p1578_p13 = por %p1524_p1, %p59_p10  ;;  %p259_p2 = scmp.eq.s32.totalorder %s983_s17, 1 }
  0x25   : > { %p1582_p0 = por %p253_p11, %p53_p8  ;;  %p55_p4 = por %p54_p9, %p53_p8 }
  0x26   : > { %s1587_s28 = scalar_select %p44_p12, %s1414_s11, %s46_s24  }
  0x27   : > { %p1589_p5 = por %p259_p2, %p59_p10  ;;  %s347_s22 = sand.u32 1, %s1414_s11  }
  0x28   : > { %s991_s29 = sshll.u32 %s1422_s13, 2  ;;  %p1100_p7 = scmp.lt.s32.totalorder %s1426_s14, 2 }
  0x29   : > { %s990_s18 = sshll.u32 %s347_s22, 2  ;;  %s355_s25 = scalar_lea.hbm %s1712_s0, %s991_s29 }
  0x2a   : > { %s357_s1 = sshll.u32 %s355_s25, 4  ;;  %s351_s3 = scalar_lea.vmem [#allocation6], %s990_s18  ;;  %s358_s1 = int_to_ptr.hbm [resolvable:$true] %s357_s1 }
  0x2b   : > { %s359_s5 = sshll.u32 %s351_s3, 4  ;;  %p1089_p11 = pnand %p1100_p7, %p55_p4  ;;  %s360_s5 = int_to_ptr.vmem [resolvable:$true] %s359_s5 }
  0x2c   : > { %s348_s17 = scalar_lea.sflag [#allocation7], %s347_s22  ;;  %368 = sbr.rel (%p1532_p3) target bundleno = 993 (0x3e1), region = 56 }
  0x2d   : > { %1091 = dma.hbm_to_vmem [thread:$0]  (!%p1089_p11), %s358_s1, 64, %s360_s5, %s348_s17  }
  0x2e   : > { %s1602_s24 = sand.u32 (!%p1532_p3), 1, %s1410_s10  }
  0x2f   : > { %s993_s7 = sshll.u32 (!%p1532_p3), %s1602_s24, 2  ;;  %s371_s21 = scalar_lea.sflag (!%p1532_p3), [#allocation7], %s1602_s24 }
  0x30   : > { %s374_s29 = scalar_lea.vmem (!%p1532_p3), [#allocation6], %s993_s7 }
  0x31   : > { %1389 = dma.done.wait (%p1578_p13), %s371_s21, 64  }
  0x32   : > { %1391 = vsyncadd (%p1578_p13), %s371_s21, 4294967232 }
  0x33   : > { %1393 = dma.done.wait (%p1524_p1), [#allocation10], 512  }
  0x34   : > { %1395 = vsyncadd (%p1524_p1), [#allocation10], 4294966784 }
  0x35   : > { %1397 = dma.done.wait (%p1524_p1), [#allocation13], 512  }
  0x36   : > { %1399 = vsyncadd (%p1524_p1), [#allocation13], 4294966784  ;;  %v1048_v0 = vld [vmem:[#allocation11 + $0x8] sm:$0xff]  ;;  %v1052_v1 = vld [vmem:[#allocation9 + $0x8] sm:$0xff]  ;;  %vm456_vm0 = vcmask 261120   ;;  %vm507_vm1 = vcmask 257024  }
  0x37   : > { %v1047_v2 = vld [vmem:[#allocation11] sm:$0xff]  ;;  %466 = vmatpush.bf16.msra.mxu0 %v1048_v0  ;;  %547 = vmatpush.bf16.msra.mxu2 %v1052_v1  ;;  %v1051_v3 = vld [vmem:[#allocation9] sm:$0xff]  ;;  %v435_v4 = vld [vmem:[%s374_s29] sm:$0xf]  ;;  %vm560_vm2 = vcmask 64512   ;;  %s1434_s16 = smov 112  }
  0x38   : > { %v516_v5 = vld [vmem:[%s374_s29] sm:$0xf]  ;;  %v1166_v6 = vld [vmem:[%s1716_s4] ss:$0 sm:$0xff]  ;;  %v1049_v10 = vld [vmem:[#allocation12] sm:$0xff]  ;;  %s1435_s20 = smov 120  }
  0x39   : > { %v1050_v7 = vld [vmem:[#allocation12 + $0x8] sm:$0xff]  ;;  %s1436_s23 = smov 104   ;;  %vm593_vm3 = vcmask 1043456   ;;  %s1437_s15 = smov 8   ;;  %vm802_vm4 = vcmask 130048   ;;  %vm804_vm5 = vcmask 195584  }
  0x3a   : > { %499 = vmatpush.bf16.msra.mxu1 %v1050_v7  ;;  %v1167_v12 = vld [vmem:[%s1714_s2] ss:$0 sm:$0xff]  ;;  %s1438_s25 = smov 16   ;;  %s1439_s17 = smov 24  }
  0x3b   : > { %467 = vmatpush.bf16.msra.mxu0 %v1047_v2  ;;  %548 = vmatpush.bf16.msra.mxu2 %v1051_v3  ;;  %v1168_v25 = vld [vmem:[%s1718_s6] ss:$0 sm:$0xff]  ;;  %s1044_s21 = sshll.u32 %s1418_s12, 3  ;;  %s998_s29 = sshll.u32 %s1602_s24, 3 }
  0x3c   : > { %s858_s5 = scalar_lea.hbm %s1721_s9, %s1044_s21  ;;  %s847_s12 = scalar_lea.sflag [#allocation8], %s1602_s24 }
  0x3d   : > { %s862_s22 = sshll.u32 %s858_s5, 4  ;;  %s1356_s21 = scalar_lea.hbm %s1721_s9, 16  ;;  %s863_s22 = int_to_ptr.hbm [resolvable:$true] %s862_s22 }
  0x3e   : > { %1007 = vmatmul.msk.bf16.vlgmr.msra.gmra.mxu0 %vm456_vm0, %v435_v4  ;;  %1025 = vmatmul.msk.bf16.vlgmr.msra.gmra.mxu2 %vm456_vm0, %v516_v5  ;;  %s1350_s18 = sshra.s32 %s863_s22, 4  ;;  %s1351_s18 = int_to_ptr.hbm [resolvable:$true] %s1350_s18 }
  0x3f   : > { %500 = vmatpush.bf16.msra.mxu1 %v1049_v10  ;;  %p1357_p9 = scmp.lt.s32.totalorder %s1351_s18, %s1721_s9 }
  0x42   : > { %1016 = vmatmul.msk.bf16.vlgmr.msra.gmra.mxu1 %vm456_vm0, %v435_v4 }
  0xbb   : > { %v469_v8 = vpop.f32.mrf.mxu0 }
  0xbc   : > { %v470_v9 = vadd.f32 %v1166_v6, %v469_v8 }
  0xbe   : > { %v506_v11 = vpack.c.bf16 %v470_v9, %v470_v9 }
  0xbf   : > { %v502_v30 = vpop.f32.mrf.mxu1 }
  0xc0   : > { %508 = vst.msk [vmem:[#allocation2] sm:$0xf] %vm507_vm1, %v506_v11  ;;  %v503_v31 = vadd.f32 %v1168_v25, %v502_v30 }
  0xc1   : > { %v550_v13 = vpop.f32.mrf.mxu2 }
  0xc2   : > { %v551_v14 = vadd.f32 %v1167_v12, %v550_v13  ;;  %v509_v32 = vpack.c.bf16 %v503_v31, %v503_v31 }
  0xc3   : > { %v471_v15 = vpop.f32.mrf.mxu0 }
  0xc4   : > { %v554_v16 = vpack.c.bf16 %v551_v14, %v551_v14  ;;  %510 = vst.msk [vmem:[#allocation3] sm:$0xf] %vm507_vm1, %v509_v32 }
  0xc6   : > { %556 = vst.msk [vmem:[#allocation4] sm:$0xf] %vm507_vm1, %v554_v16 }
  0xc7   : > { %v558_v17 = vld [vmem:[#allocation2] sm:$0xf]  ;;  %v504_v37 = vpop.f32.mrf.mxu1 }
  0xc8   : > { %v565_v18 = vsel %vm560_vm2, %v558_v17, 0  ;;  %v618_v19 = vunpack.c.l.b16 %v558_v17 }
  0xc9   : > { %v552_v20 = vpop.f32.mrf.mxu2  ;;  %574 = vmatpush.bf16.xpose.msra.mxu3 %v565_v18 }
  0xca   : > { %v619_v21 = vpack.c.b16 %v618_v19, %v618_v19 }
  0xcb   : > { %v559_v38 = vld [vmem:[#allocation3] sm:$0xf] }
  0xcc   : > { %679 = vrot.lane.b32.xlu1 %v619_v21, %s1434_s16  ;;  %620 = vrot.lane.b32.xlu0 %v619_v21, %s1435_s20  ;;  %v595_v39 = vsel %vm593_vm3, %v559_v38, 0  ;;  %v652_v40 = vunpack.c.l.b16 %v559_v38  ;;  %v1054_v38 = vld [vmem:[#allocation14 + $0x8] sm:$0xff] }
  0xcd   : > { %v557_v22 = vld [vmem:[#allocation4] sm:$0xf]  ;;  %604 = vmatpush.bf16.msrb.mxu0 %v595_v39 }
  0xce   : > { %v613_v23 = vunpack.c.l.b16 %v557_v22  ;;  %v653_v41 = vpack.c.b16 %v652_v40, %v652_v40  ;;  %v1053_v39 = vld [vmem:[#allocation14] sm:$0xff] }
  0xd0   : > { %1026 = vmatmul.msk.bf16.vlgmr.msra.gmra.mxu3 %vm560_vm2, %v557_v22  ;;  %v614_v24 = vpack.c.b16 %v613_v23, %v613_v23 }
  0xd2   : > { %677 = vrot.lane.b32.xlu2 %v614_v24, %s1434_s16 }
  0xd4   : > { %735 = vrot.lane.b32.xlu1 %v619_v21, %s1436_s23  ;;  %615 = vrot.lane.b32.xlu0 %v614_v24, %s1435_s20 }
  0xda   : > { %733 = vrot.lane.b32.xlu2 %v614_v24, %s1436_s23 }
  0xe2   : > { %654 = vrot.lane.b32.xlu2 %v653_v41, %s1435_s20  ;;  %s429_s20 = scalar_lea.vmem [#allocation15], %s998_s29 }
 0x12c   : > { %v678_v33 = vpop.permute.xlu2 %677 }
 0x134   : > { %v734_v44 = vpop.permute.xlu2 %733 }
 0x13c   : > { %v655_v54 = vpop.permute.xlu2 %654 }
 0x13d   : > { %v660_v55 = vsel %vm593_vm3, %v655_v54, 0 }
 0x13e   : > { %v680_v26 = vpop.permute.xlu1 %679  ;;  %v621_v27 = vpop.permute.xlu0 %620  ;;  %669 = vmatpush.bf16.msrb.mxu2 %v660_v55 }
 0x13f   : > { %v626_v28 = vsel %vm560_vm2, %v621_v27, 0  ;;  %v685_v29 = vsel %vm560_vm2, %v680_v26, 0 }
 0x140   : > { %635 = vmatpush.bf16.xpose.msrb.mxu1 %v626_v28  ;;  %694 = vmatpush.bf16.xpose.msrb.mxu3 %v685_v29 }
 0x146   : > { %v736_v34 = vpop.permute.xlu1 %735  ;;  %v616_v35 = vpop.permute.xlu0 %615 }
 0x147   : > { %v741_v36 = vsel %vm560_vm2, %v736_v34, 0  ;;  %1028 = vmatmul.msk.bf16.vlgmr.msrb.gmra.mxu1 %vm560_vm2, %v616_v35  ;;  %1030 = vmatmul.msk.bf16.vlgmr.msrb.gmra.mxu3 %vm560_vm2, %v678_v33 }
 0x148   : > { %750 = vmatpush.bf16.xpose.msra.mxu1 %v741_v36  ;;  %838 = vmatpush.bf16.msra.mxu3 %v1054_v38 }
 0x14c   : > { %839 = vmatpush.bf16.msra.mxu3 %v1053_v39 }
 0x153   : > { %v576_v42 = vpop.f32.mrf.mxu3 }
 0x154   : > { %v580_v43 = vsel %vm560_vm2, %v576_v42, -inf }
 0x155   : > { %581 = vmax.xlane.f32.xlu1 %v580_v43 }
 0x157   : > { %1032 = vmatmul.msk.bf16.vlgmr.msra.gmra.mxu1 %vm560_vm2, %v734_v44 }
 0x15b   : > { %v578_v45 = vpop.f32.mrf.mxu3 }
 0x16e   : > { %766 = vrot.lane.b32.xlu1 %v653_v41, %s1436_s23  ;;  %s860_s23 = sshll.u32 %s429_s20, 4  ;;  %s861_s23 = int_to_ptr.vmem [resolvable:$true] %s860_s23 }
 0x1c4   : > { %v637_v46 = vpop.f32.mrf.mxu1 }
 0x1c5   : > { %v641_v47 = vsel %vm560_vm2, %v637_v46, -inf }
 0x1c6   : > { %642 = vmax.xlane.f32.xlu0 %v641_v47 }
 0x1c8   : > { %v582_v48 = vpop.xlane.xlu1 %581 }
 0x1c9   : > { %v583_v49 = vsub.f32 %v576_v42, %v582_v48 }
 0x1ca   : > { %v696_v50 = vpop.f32.mrf.mxu3 }
 0x1cb   : > { %v584_v51 = vmul.f32 1.442695, %v583_v49  ;;  %v700_v53 = vsel %vm560_vm2, %v696_v50, -inf }
 0x1cc   : > { %v639_v52 = vpop.f32.mrf.mxu1 }
 0x1cd   : > { %1170 = vpow2.f32 %v584_v51  ;;  %v1169_v51 = vld [vmem:[%s1720_s8] ss:$0 sm:$0xff] }
 0x1ce   : > { %701 = vmax.xlane.f32.xlu0 %v700_v53 }
 0x1d2   : > { %v698_v56 = vpop.f32.mrf.mxu3 }
 0x1d3   : > { %v1171_v57 = vpop.eup %1170 }
 0x1d4   : > { %v752_v58 = vpop.f32.mrf.mxu1  ;;  %v586_v59 = vsel %vm560_vm2, %v1171_v57, 0.0  ;;  %v589_v60 = vpack.c.bf16 %v1171_v57, %v1171_v57 }
 0x1d5   : > { %587 = vadd.xlane.f32.xlu1 %v586_v59  ;;  %v756_v61 = vsel %vm560_vm2, %v752_v58, -inf }
 0x1d6   : > { %757 = vmax.xlane.f32.xlu2 %v756_v61  ;;  %1027 = vmatmul.msk.bf16.vlgmr.msrb.gmra.mxu0 %vm560_vm2, %v589_v60 }
 0x1dc   : > { %v754_v62 = vpop.f32.mrf.mxu1 }
 0x1e0   : > { %v767_v63 = vpop.permute.xlu1 %766 }
 0x1e1   : > { %v772_v0 = vsel %vm593_vm3, %v767_v63, 0 }
 0x1e2   : > { %781 = vmatpush.bf16.msra.mxu2 %v772_v0 }
 0x1ee   : > { %710 = vrot.lane.b32.xlu2 %v653_v41, %s1434_s16 }
 0x239   : > { %v643_v1 = vpop.xlane.xlu0 %642 }
 0x23a   : > { %v644_v2 = vsub.f32 %v637_v46, %v643_v1 }
 0x23c   : > { %v645_v3 = vmul.f32 1.442695, %v644_v2 }
 0x23e   : > { %1172 = vpow2.f32 %v645_v3 }
 0x241   : > { %v702_v4 = vpop.xlane.xlu0 %701 }
 0x242   : > { %v703_v5 = vsub.f32 %v696_v50, %v702_v4 }
 0x244   : > { %v1173_v6 = vpop.eup %1172  ;;  %v704_v7 = vmul.f32 1.442695, %v703_v5 }
 0x245   : > { %v647_v8 = vsel %vm560_vm2, %v1173_v6, 0.0  ;;  %v650_v9 = vpack.c.bf16 %v1173_v6, %v1173_v6 }
 0x246   : > { %1174 = vpow2.f32 %v704_v7  ;;  %648 = vadd.xlane.f32.xlu0 %v647_v8 }
 0x247   : > { %1029 = vmatmul.msk.bf16.vlgmr.msrb.gmra.mxu2 %vm560_vm2, %v650_v9 }
 0x248   : > { %v588_v40 = vpop.xlane.xlu1 %587 }
 0x249   : > { %v758_v10 = vpop.xlane.xlu2 %757 }
 0x24a   : > { %v759_v11 = vsub.f32 %v752_v58, %v758_v10 }
 0x24c   : > { %v1175_v12 = vpop.eup %1174  ;;  %v760_v13 = vmul.f32 1.442695, %v759_v11 }
 0x24d   : > { %v706_v14 = vsel %vm560_vm2, %v1175_v12, 0.0  ;;  %v709_v19 = vpack.c.bf16 %v1175_v12, %v1175_v12 }
 0x24e   : > { %1176 = vpow2.f32 %v760_v13  ;;  %707 = vadd.xlane.f32.xlu0 %v706_v14 }
 0x251   : > { %v711_v15 = vpop.permute.xlu2 %710 }
 0x252   : > { %v716_v16 = vsel %vm593_vm3, %v711_v15, 0 }
 0x253   : > { %v606_v17 = vpop.f32.mrf.mxu0  ;;  %725 = vmatpush.bf16.msra.mxu0 %v716_v16 }
 0x254   : > { %v1177_v18 = vpop.eup %1176 }
 0x255   : > { %v765_v20 = vpack.c.bf16 %v1177_v18, %v1177_v18  ;;  %v762_v21 = vsel %vm560_vm2, %v1177_v18, 0.0 }
 0x256   : > { %1031 = vmatmul.msk.bf16.vlgmr.msra.gmra.mxu0 %vm560_vm2, %v709_v19  ;;  %763 = vadd.xlane.f32.xlu0 %v762_v21 }
 0x257   : > { %1033 = vmatmul.msk.bf16.vlgmr.msra.gmra.mxu2 %vm560_vm2, %v765_v20 }
 0x25b   : > { %v608_v22 = vpop.f32.mrf.mxu0 }
 0x2b9   : > { %v649_v23 = vpop.xlane.xlu0 %648 }
 0x2ba   : > { %1178 = vrcp.f32 %v649_v23 }
 0x2c0   : > { %v1179_v25 = vpop.eup %1178 }
 0x2c1   : > { %v708_v24 = vpop.xlane.xlu0 %707 }
 0x2c2   : > { %1180 = vrcp.f32 %v708_v24 }
 0x2c8   : > { %v1181_v30 = vpop.eup %1180 }
 0x2c9   : > { %v764_v28 = vpop.xlane.xlu0 %763 }
 0x2ca   : > { %v671_v26 = vpop.f32.mrf.mxu2  ;;  %1182 = vrcp.f32 %v764_v28 }
 0x2cb   : > { %v676_v27 = vmul.f32 %v1179_v25, %v671_v26  ;;  %1184 = vrcp.f32 %v588_v40 }
 0x2cd   : > { %790 = vrot.lane.b32.xlu2 %v676_v27, %s1437_s15  ;;  %s1352_s15 = scalar_lea.hbm %s1351_s18, 8 }
 0x2ce   : > { %p1353_p1 = scmp.ne.s32.totalorder %s1351_s18, %s1352_s15  ;;  %p1358_p10 = scmp.lt.s32.totalorder %s1356_s21, %s1352_s15 }
 0x2d0   : > { %v1183_v33 = vpop.eup %1182  ;;  %p1354_p3 = pnand %p1353_p1, %p1582_p0  ;;  %p1359_p12 = por %p1358_p10, %p1357_p9 }
 0x2d1   : > { %v1185_v42 = vpop.eup %1184 }
 0x2d2   : > { %v673_v29 = vpop.f32.mrf.mxu2  ;;  %v611_v43 = vmul.f32 %v1185_v42, %v606_v17  ;;  %p1355_p8 = pneg %p1354_p3 }
 0x2d3   : > { %v727_v31 = vpop.f32.mrf.mxu0 }
 0x2d4   : > { %v732_v32 = vmul.f32 %v1181_v30, %v727_v31  ;;  %p1360_p13 = pnand %p1359_p12, %p1355_p8 }
 0x2d6   : > { %794 = vrot.lane.b32.xlu0 %v732_v32, %s1438_s25 }
 0x2da   : > { %v783_v34 = vpop.f32.mrf.mxu2 }
 0x2db   : > { %v788_v35 = vmul.f32 %v1183_v33, %v783_v34  ;;  %v729_v36 = vpop.f32.mrf.mxu0 }
 0x2dd   : > { %798 = vrot.lane.b32.xlu2 %v788_v35, %s1439_s17 }
 0x2e2   : > { %v785_v37 = vpop.f32.mrf.mxu2 }
 0x327   : > { %v791_v41 = vpop.permute.xlu2 %790 }
 0x328   : > { %v801_v44 = vsel %vm560_vm2, %v611_v43, %v791_v41 }
 0x337   : > { %v799_v46 = vpop.permute.xlu2 %798 }
 0x348   : > { %v795_v45 = vpop.permute.xlu0 %794 }
 0x349   : > { %v803_v47 = vsel %vm802_vm4, %v801_v44, %v795_v45 }
 0x34a   : > { %v805_v48 = vsel %vm804_vm5, %v803_v47, %v799_v46 }
 0x34b   : > { %v806_v49 = vpack.c.bf16 %v805_v48, %v805_v48 }
 0x34d   : > { %807 = vst.msk [vmem:[#allocation5] sm:$0xf] %vm507_vm1, %v806_v49 }
 0x354   : > { %v808_v50 = vld [vmem:[#allocation5] sm:$0xf] }
 0x355   : > { %1042 = vmatmul.msk.bf16.vlgmr.msra.gmra.mxu3 %vm456_vm0, %v808_v50 }
 0x3d8   : > { %v841_v52 = vpop.f32.mrf.mxu3 }
 0x3d9   : > { %v842_v53 = vadd.f32 %v1169_v51, %v841_v52 }
 0x3db   : > { %845 = vst.msk [vmem:[%s429_s20] sm:$0xff] %vm456_vm0, %v842_v53 }
 0x3dc   : > { %1363 = shalt.err (!%p1360_p13)
}
 0x3dd   : > { %1073 = dma.vmem_to_hbm [thread:$0]  (%p1582_p0), %s861_s23, 128, %s863_s22, %s847_s12  }
 0x3e0   : > { %v843_v54 = vpop.f32.mrf.mxu3 }
 0x3e1 PF: > { %s874_s24 = sand.u32 1, %s1406_s30   ;;  %p1093_p2 = pnand %p989_p6, %p1589_p5 }
 0x3e2   : > { %s875_s3 = scalar_lea.sflag [#allocation8], %s874_s24 }
 0x3e3   : > { %p1094_p4 = pneg %p1093_p2 }
 0x3e5   : > { %1401 = dma.done.wait (%p1094_p4), %s875_s3, 128  }
 0x3e6   : > { %1403 = vsyncadd (%p1094_p4), %s875_s3, 4294967168  ;;  %s27_s14 = sadd.s32 1, %s1426_s14   ;;  %s1738_s30 = smov %s1410_s10 }
 0x3e7   : > { %p24_p7 = scmp.ge.s32.totalorder %s27_s14, 4   ;;  %s1739_s10 = smov %s1414_s11 }
 0x3e8   : > { %s1740_s11 = smov %s1587_s28  ;;  %s1741_s12 = smov %s1422_s13 }
 0x3e9   : > { %s1742_s13 = smov %s1744_s26  ;;  %26 = sbr.rel (!%p24_p7) target bundleno = 13 (0xd), region = 122 }
 0x3ee   :  { %881 = vsyncpa [#allocation7], 1 }
 0x3ef   :  { %883 = vsyncpa [#allocation7 + $0x1], 1 }
 0x3f0   :  { %884 = vsyncpa [#allocation10], 1 }
 0x3f1   :  { %885 = vsyncpa [#allocation13], 1 }
 0x3f2   :  { %886 = vsyncpa [#allocation8], 1 }
 0x3f3   :  { %888 = vsyncpa [#allocation8 + $0x1], 1 }

</bundles_post_ra>
